<compile_context>
chip_gen: v7x
topology: tpu7x:2x2x1
jax: 0.10.0
libtpu: 0.0.40
codegen_flags: <defaults>
</compile_context>

<pallas_src>
import functools

import jax
import jax.numpy as jnp
from jax.experimental import pallas as pl
from jax.experimental.pallas import tpu as pltpu

LEAKY_SLOPE = 0.01
BN_EPS = 1e-5
LANE = 128
SUBLANE = 8
# bf16 MXU operands (f32 accumulation).  Set to jnp.float32 for ~1e-4 agreement
# with the pure-f32 reference (bf16 deviates at the ~1e-2 level after two BNs).
MATMUL_DTYPE = jnp.bfloat16
DEFAULT_TILE_M = 512  # >=512 rows/tile -> ~85% of HBM roofline per measured Pallas data


def _round_up(x, m):
    return (x + m - 1) // m * m


def _vmem_limit_bytes():
    """Generation-aware scoped-VMEM limit: ~85% of physical (v5e/v6e 128MiB, v7x 64MiB)."""
    try:
        info = pltpu.get_tpu_info()
        cap = getattr(info, "vmem_capacity_bytes", None)
        if cap:
            return int(cap * 0.85)
    except Exception:
        pass
    return 48 * 1024 * 1024  # conservative fallback


# ------------------------------------------------------------------- pass 1 ----
def _conv_stats_kernel(col_ref, w_ref, y_ref, stat_ref):
    """y_tile = col_tile @ w (single packed-K MXU dot) + BN partial sums.

    col_ref : (TM, Kp)  bf16 tap-packed im2col rows (lane-dense)
    w_ref   : (Kp, Cp)  bf16 weight, rows ordered (kh, kw, cin)
    y_ref   : (TM, Cp)  f32 pre-BN conv output tile
    stat_ref: (2,  Cp)  f32 grid-resident accumulator: row0 = sum(y), row1 = sum(y*y)
    """
    y = jnp.dot(col_ref[...], w_ref[...], preferred_element_type=jnp.float32)
    y_ref[...] = y

    @pl.when(pl.program_id(0) == 0)
    def _init():
        stat_ref[...] = jnp.zeros_like(stat_ref)

    s = jnp.sum(y, axis=0, keepdims=True)
    ss = jnp.sum(y * y, axis=0, keepdims=True)
    # TODO(synk): one-pass E[y^2]-E[y]^2 can cancel when |mean| >> std; switch to a
    # per-tile-centered Welford/Chan combine for very deep / high-mean regimes.
    stat_ref[...] = stat_ref[...] + jnp.concatenate([s, ss], axis=0)


# ------------------------------------------------------------------- pass 2 ----
def _bn_act_kernel(inv_count, y_ref, stat_ref, g_ref, b_ref, o_ref):
    """Training-mode BatchNorm affine fused with leaky_relu(0.01); unpadded store."""
    mean = stat_ref[0:1, :] * inv_count
    var = jnp.maximum(stat_ref[1:2, :] * inv_count - mean * mean, 0.0)
    a = g_ref[...] * jax.lax.rsqrt(var + BN_EPS)   # per-channel scale (EUP rsqrt)
    c = b_ref[...] - mean * a                      # per-channel shift
    z = y_ref[...] * a + c
    z = jnp.maximum(z, LEAKY_SLOPE * z)            # one VPU max instead of cmp+select
    o_ref[...] = z[:, : o_ref.shape[-1]]           # drop the lane padding on writeback


# --------------------------------------------------------------- per-block ----
def _conv_bn_act_block(x_nhwc, w_hwio, gamma, beta, *, tile_m=DEFAULT_TILE_M):
    """conv3x3('same', no bias) -> BatchNorm2d(train) -> leaky_relu(0.01)."""
    N, H, W, Cin = x_nhwc.shape
    Cout = w_hwio.shape[-1]
    M = N * H * W
    K = 9 * Cin
    Kp = _round_up(K, LANE)               # pack (kh,kw,cin) jointly, pad ONCE
    Cp = _round_up(Cout, LANE)
    TM = tile_m if M >= tile_m else _round_up(M, SUBLANE)
    Mp = _round_up(M, TM)
    n_tiles = Mp // TM

    # Tap-packed, lane-dense im2col built with XLA in the wrapper (layout plumbing):
    # row m=(n,h,w) holds [x_pad[n, h+kh, w+kw, ci]] in (kh, kw, ci) order.
    xp = jnp.pad(x_nhwc.astype(jnp.float32), ((0, 0), (1, 1), (1, 1), (0, 0)))
    taps = [xp[:, kh:kh + H, kw:kw + W, :] for kh in range(3) for kw in range(3)]
    col = jnp.concatenate(taps, axis=-1).reshape(M, K)
    col = jnp.pad(col, ((0, Mp - M), (0, Kp - K))).astype(MATMUL_DTYPE)

    wk = jnp.pad(w_hwio.astype(jnp.float32).reshape(K, Cout),
                 ((0, Kp - K), (0, Cp - Cout))).astype(MATMUL_DTYPE)
    g = jnp.pad(gamma.reshape(-1).astype(jnp.float32), (0, Cp - Cout)).reshape(1, Cp)
    b = jnp.pad(beta.reshape(-1).astype(jnp.float32), (0, Cp - Cout)).reshape(1, Cp)

    vmem_limit = _vmem_limit_bytes()

    # pass 1: conv (packed-K matmul) + BN partial sums (grid-resident accumulator).
    y, stats = pl.pallas_call(
        _conv_stats_kernel,
        grid=(n_tiles,),
        in_specs=[pl.BlockSpec((TM, Kp), lambda i: (i, 0)),
                  pl.BlockSpec((Kp, Cp), lambda i: (0, 0))],
        out_specs=(pl.BlockSpec((TM, Cp), lambda i: (i, 0)),
                   pl.BlockSpec((2, Cp), lambda i: (0, 0))),
        out_shape=(jax.ShapeDtypeStruct((Mp, Cp), jnp.float32),
                   jax.ShapeDtypeStruct((2, Cp), jnp.float32)),
        compiler_params=pltpu.CompilerParams(
            # TODO(synk): the resident stats accumulator forces "arbitrary"; per-core
            # partial sums would let this pass use the second v7x TensorCore too.
            dimension_semantics=("arbitrary",),
            vmem_limit_bytes=vmem_limit),
    )(col, wk)

    # pass 2: BN affine + leaky_relu, "parallel" over M tiles, unpadded-channel output.
    z = pl.pallas_call(
        functools.partial(_bn_act_kernel, 1.0 / float(M)),
        grid=(n_tiles,),
        in_specs=[pl.BlockSpec((TM, Cp), lambda i: (i, 0)),
                  pl.BlockSpec((2, Cp), lambda i: (0, 0)),
                  pl.BlockSpec((1, Cp), lambda i: (0, 0)),
                  pl.BlockSpec((1, Cp), lambda i: (0, 0))],
        out_specs=pl.BlockSpec((TM, Cout), lambda i: (i, 0)),
        out_shape=jax.ShapeDtypeStruct((Mp, Cout), jnp.float32),
        compiler_params=pltpu.CompilerParams(
            dimension_semantics=("parallel",),
            vmem_limit_bytes=vmem_limit),
    )(y, stats, g, b)

    return z[:M].reshape(N, H, W, Cout)


def dual_conv_forward(x_nchw, params):
    """x_nchw: (N, C_in, H, W) float32 (PyTorch layout). Returns (N, C_out, H, W)."""
    w1, b1, g1, be1, w2, b2, g2, be2 = params
    # Conv biases are exact no-ops under training-mode BatchNorm (cancelled by the
    # per-channel mean subtraction); the f32 reference keeps them and still matches.
    del b1, b2
    x = jnp.transpose(x_nchw, (0, 2, 3, 1)).astype(jnp.float32)   # NCHW -> NHWC
    z1 = _conv_bn_act_block(x, w1, g1, be1)
    z2 = _conv_bn_act_block(z1, w2, g2, be2)
    return jnp.transpose(z2, (0, 3, 1, 2))                        # NHWC -> NCHW


# ------------------------------------------------------------------ checks ----
def reference_forward(x_nchw, params):
    """Pure-JAX f32 reference (includes conv biases, two-pass BN) for verification."""
    w1, b1, g1, be1, w2, b2, g2, be2 = params
    x = jnp.transpose(x_nchw, (0, 2, 3, 1)).astype(jnp.float32)

    def conv(x, w, b):
        y = jax.lax.conv_general_dilated(
            x, w, window_strides=(1, 1), padding="SAME",
            dimension_numbers=("NHWC", "HWIO", "NHWC"))
        return y + b.reshape(1, 1, 1, -1)

    def bn(y, g, be):
        m = y.mean(axis=(0, 1, 2), keepdims=True)
        v = ((y - m) ** 2).mean(axis=(0, 1, 2), keepdims=True)
        return (y - m) / jnp.sqrt(v + BN_EPS) * g.reshape(1, 1, 1, -1) + be.reshape(1, 1, 1, -1)

    def lr(y):
        return jnp.where(y >= 0, y, LEAKY_SLOPE * y)

    y = lr(bn(conv(x, w1, b1), g1, be1))
    y = lr(bn(conv(y, w2, b2), g2, be2))
    return jnp.transpose(y, (0, 3, 1, 2))


def make_params(key, c_in, c_out):
    ks = jax.random.split(key, 8)
    w1 = 0.1 * jax.random.normal(ks[0], (3, 3, c_in, c_out), jnp.float32)
    b1 = 0.1 * jax.random.normal(ks[1], (1, c_out), jnp.float32)
    g1 = 1.0 + 0.1 * jax.random.normal(ks[2], (1, c_out), jnp.float32)
    be1 = 0.1 * jax.random.normal(ks[3], (1, c_out), jnp.float32)
    w2 = 0.1 * jax.random.normal(ks[4], (3, 3, c_out, c_out), jnp.float32)
    b2 = 0.1 * jax.random.normal(ks[5], (1, c_out), jnp.float32)
    g2 = 1.0 + 0.1 * jax.random.normal(ks[6], (1, c_out), jnp.float32)
    be2 = 0.1 * jax.random.normal(ks[7], (1, c_out), jnp.float32)
    return (w1, b1, g1, be1, w2, b2, g2, be2)


if __name__ == "__main__":
    key = jax.random.PRNGKey(0)
    k_x, k_p = jax.random.split(key)

    N, C_IN, C_OUT, H, W = 2, 4, 8, 16, 16
    x = jax.random.normal(k_x, (N, C_IN, H, W), jnp.float32)   # PyTorch NCHW input
    params = make_params(k_p, C_IN, C_OUT)

    out = jax.block_until_ready(jax.jit(dual_conv_forward)(x, params))
    ref = jax.block_until_ready(reference_forward(x, params))

    assert out.shape == (N, C_OUT, H, W)
    # bf16 MXU operands (f32 accumulation) deviate from the pure-f32 reference at the
    # ~1e-2 level after two BatchNorms; MATMUL_DTYPE = f32 recovers 1e-4 agreement.
    tol = 1e-4 if MATMUL_DTYPE == jnp.float32 else 5e-2
    assert jnp.allclose(out, ref, atol=tol, rtol=tol), "mismatch vs JAX reference"

    print("KERNEL_OK")
</pallas_src>

<mosaic_0001>
module attributes {stable_mosaic.version = 11 : i64} {
  func.func @_conv_stats_kernel(%arg0: i32, %arg1: memref<512x128xbf16, #tpu.memory_space<vmem>>, %arg2: memref<128x128xbf16, #tpu.memory_space<vmem>>, %arg3: memref<512x128xf32, #tpu.memory_space<vmem>>, %arg4: memref<2x128xf32, #tpu.memory_space<vmem>>) attributes {dimension_semantics = [#tpu.dimension_semantics<arbitrary>], iteration_bounds = array<i64: 1>, scalar_prefetch = 0 : i64, scratch_operands = 0 : i64, tpu.core_type = #tpu.core_type<tc>, window_params = [{transform_indices = @transform_0, window_bounds = array<i64: 512, 128>}, {pipeline_mode = #tpu.pipeline_mode<synchronous>, transform_indices = @transform_1, window_bounds = array<i64: 128, 128>}, {transform_indices = @transform_2, window_bounds = array<i64: 512, 128>}, {pipeline_mode = #tpu.pipeline_mode<synchronous>, transform_indices = @transform_3, window_bounds = array<i64: 2, 128>}]} {
    %c0 = arith.constant 0 : index
    %c0_0 = arith.constant 0 : index
    %0 = vector.load %arg1[%c0, %c0_0] : memref<512x128xbf16, #tpu.memory_space<vmem>>, vector<512x128xbf16>
    %c0_1 = arith.constant 0 : index
    %c0_2 = arith.constant 0 : index
    %1 = vector.load %arg2[%c0_1, %c0_2] : memref<128x128xbf16, #tpu.memory_space<vmem>>, vector<128x128xbf16>
    %cst = arith.constant dense<0.000000e+00> : vector<512x128xf32>
    %2 = tpu.matmul %0, %1, %cst {dimension_numbers = #tpu.dot_dimension_numbers<[1], [0], [0], [1], [0, 0, 1, 1], [], []>} : vector<512x128xbf16>, vector<128x128xbf16>, vector<512x128xf32> -> vector<512x128xf32>
    %c0_3 = arith.constant 0 : index
    %c0_4 = arith.constant 0 : index
    %3 = vector.load %arg3[%c0_3, %c0_4] : memref<512x128xf32, #tpu.memory_space<vmem>>, vector<512x128xf32>
    tpu.vector_store %arg3[%c0_3, %c0_4], %2 {strides = array<i32>} : memref<512x128xf32, #tpu.memory_space<vmem>>, vector<512x128xf32>,
    %c0_i32 = arith.constant 0 : i32
    %4 = arith.cmpi eq, %arg0, %c0_i32 : i32
    %5 = arith.extui %4 : i1 to i32
    %c0_i32_5 = arith.constant 0 : i32
    %6 = arith.cmpi ne, %5, %c0_i32_5 : i32
    scf.if %6 {
      %cst_12 = arith.constant 0.000000e+00 : f32
      %16 = vector.broadcast %cst_12 : f32 to vector<2x128xf32>
      %c0_13 = arith.constant 0 : index
      %c0_14 = arith.constant 0 : index
      %17 = vector.load %arg4[%c0_13, %c0_14] : memref<2x128xf32, #tpu.memory_space<vmem>>, vector<2x128xf32>
      tpu.vector_store %arg4[%c0_13, %c0_14], %16 {strides = array<i32>} : memref<2x128xf32, #tpu.memory_space<vmem>>, vector<2x128xf32>,
    } else {
    }
    %cst_6 = arith.constant dense<0.000000e+00> : vector<128xf32>
    %7 = vector.multi_reduction <add>, %2, %cst_6 [0] : vector<512x128xf32> to vector<128xf32>
    %8 = vector.shape_cast %7 : vector<128xf32> to vector<1x128xf32>
    %9 = arith.mulf %2, %2 : vector<512x128xf32>
    %cst_7 = arith.constant dense<0.000000e+00> : vector<128xf32>
    %10 = vector.multi_reduction <add>, %9, %cst_7 [0] : vector<512x128xf32> to vector<128xf32>
    %11 = vector.shape_cast %10 : vector<128xf32> to vector<1x128xf32>
    %c0_8 = arith.constant 0 : index
    %c0_9 = arith.constant 0 : index
    %12 = vector.load %arg4[%c0_8, %c0_9] : memref<2x128xf32, #tpu.memory_space<vmem>>, vector<2x128xf32>
    %13 = tpu.concatenate %8, %11 in 0 : vector<1x128xf32>, vector<1x128xf32> -> vector<2x128xf32>
    %14 = arith.addf %12, %13 : vector<2x128xf32>
    %c0_10 = arith.constant 0 : index
    %c0_11 = arith.constant 0 : index
    %15 = vector.load %arg4[%c0_10, %c0_11] : memref<2x128xf32, #tpu.memory_space<vmem>>, vector<2x128xf32>
    tpu.vector_store %arg4[%c0_10, %c0_11], %14 {strides = array<i32>} : memref<2x128xf32, #tpu.memory_space<vmem>>, vector<2x128xf32>,
    return
  }
  func.func @transform_0(%arg0: i32) -> (i32, i32) {
    %c0_i32 = arith.constant 0 : i32
    %c0_i32_0 = arith.constant 0 : i32
    return %arg0, %c0_i32 : i32, i32
  }
  func.func @transform_1(%arg0: i32) -> (i32, i32) {
    %c0_i32 = arith.constant 0 : i32
    %c0_i32_0 = arith.constant 0 : i32
    %c0_i32_1 = arith.constant 0 : i32
    return %c0_i32, %c0_i32_0 : i32, i32
  }
  func.func @transform_2(%arg0: i32) -> (i32, i32) {
    %c0_i32 = arith.constant 0 : i32
    %c0_i32_0 = arith.constant 0 : i32
    return %arg0, %c0_i32 : i32, i32
  }
  func.func @transform_3(%arg0: i32) -> (i32, i32) {
    %c0_i32 = arith.constant 0 : i32
    %c0_i32_0 = arith.constant 0 : i32
    %c0_i32_1 = arith.constant 0 : i32
    return %c0_i32, %c0_i32_0 : i32, i32
  }
}

module attributes {stable_mosaic.version = 11 : i64} {
  func.func @_bn_act_kernel(%arg0: i32, %arg1: memref<512x128xf32, #tpu.memory_space<vmem>>, %arg2: memref<2x128xf32, #tpu.memory_space<vmem>>, %arg3: memref<1x128xf32, #tpu.memory_space<vmem>>, %arg4: memref<1x128xf32, #tpu.memory_space<vmem>>, %arg5: memref<512x8xf32, #tpu.memory_space<vmem>>) attributes {dimension_semantics = [#tpu.dimension_semantics<parallel>], iteration_bounds = array<i64: 1>, scalar_prefetch = 0 : i64, scratch_operands = 0 : i64, tpu.core_type = #tpu.core_type<tc>, window_params = [{transform_indices = @transform_0, window_bounds = array<i64: 512, 128>}, {pipeline_mode = #tpu.pipeline_mode<synchronous>, transform_indices = @transform_1, window_bounds = array<i64: 2, 128>}, {pipeline_mode = #tpu.pipeline_mode<synchronous>, transform_indices = @transform_2, window_bounds = array<i64: 1, 128>}, {pipeline_mode = #tpu.pipeline_mode<synchronous>, transform_indices = @transform_3, window_bounds = array<i64: 1, 128>}, {transform_indices = @transform_4, window_bounds = array<i64: 512, 8>}]} {
    %c0 = arith.constant 0 : index
    %c0_0 = arith.constant 0 : index
    %0 = vector.load %arg2[%c0, %c0_0] : memref<2x128xf32, #tpu.memory_space<vmem>>, vector<1x128xf32>
    %cst = arith.constant 0.001953125 : f32
    %1 = vector.broadcast %cst : f32 to vector<1x128xf32>
    %2 = arith.mulf %0, %1 : vector<1x128xf32>
    %c1 = arith.constant 1 : index
    %c0_1 = arith.constant 0 : index
    %3 = vector.load %arg2[%c1, %c0_1] : memref<2x128xf32, #tpu.memory_space<vmem>>, vector<1x128xf32>
    %cst_2 = arith.constant 0.001953125 : f32
    %4 = vector.broadcast %cst_2 : f32 to vector<1x128xf32>
    %5 = arith.mulf %3, %4 : vector<1x128xf32>
    %6 = arith.mulf %2, %2 : vector<1x128xf32>
    %7 = arith.subf %5, %6 : vector<1x128xf32>
    %cst_3 = arith.constant 0.000000e+00 : f32
    %8 = vector.broadcast %cst_3 : f32 to vector<1x128xf32>
    %9 = arith.maximumf %7, %8 : vector<1x128xf32>
    %c0_4 = arith.constant 0 : index
    %c0_5 = arith.constant 0 : index
    %10 = vector.load %arg3[%c0_4, %c0_5] : memref<1x128xf32, #tpu.memory_space<vmem>>, vector<1x128xf32>
    %cst_6 = arith.constant 9.99999974E-6 : f32
    %11 = vector.broadcast %cst_6 : f32 to vector<1x128xf32>
    %12 = arith.addf %9, %11 : vector<1x128xf32>
    %13 = math.rsqrt %12 : vector<1x128xf32>
    %14 = arith.mulf %10, %13 : vector<1x128xf32>
    %c0_7 = arith.constant 0 : index
    %c0_8 = arith.constant 0 : index
    %15 = vector.load %arg4[%c0_7, %c0_8] : memref<1x128xf32, #tpu.memory_space<vmem>>, vector<1x128xf32>
    %16 = arith.mulf %2, %14 : vector<1x128xf32>
    %17 = arith.subf %15, %16 : vector<1x128xf32>
    %c0_9 = arith.constant 0 : index
    %c0_10 = arith.constant 0 : index
    %18 = vector.load %arg1[%c0_9, %c0_10] : memref<512x128xf32, #tpu.memory_space<vmem>>, vector<512x128xf32>
    %19 = vector.broadcast %14 : vector<1x128xf32> to vector<512x128xf32>
    %20 = arith.mulf %18, %19 : vector<512x128xf32>
    %21 = vector.broadcast %17 : vector<1x128xf32> to vector<512x128xf32>
    %22 = arith.addf %20, %21 : vector<512x128xf32>
    %cst_11 = arith.constant 0.00999999977 : f32
    %23 = vector.broadcast %cst_11 : f32 to vector<512x128xf32>
    %24 = arith.mulf %23, %22 : vector<512x128xf32>
    %25 = arith.maximumf %22, %24 : vector<512x128xf32>
    %26 = vector.extract_strided_slice %25 {offsets = [0, 0], sizes = [512, 8], strides = [1, 1]} : vector<512x128xf32> to vector<512x8xf32>
    %c0_12 = arith.constant 0 : index
    %c0_13 = arith.constant 0 : index
    %27 = vector.load %arg5[%c0_12, %c0_13] : memref<512x8xf32, #tpu.memory_space<vmem>>, vector<512x8xf32>
    tpu.vector_store %arg5[%c0_12, %c0_13], %26 {strides = array<i32>} : memref<512x8xf32, #tpu.memory_space<vmem>>, vector<512x8xf32>,
    return
  }
  func.func @transform_0(%arg0: i32) -> (i32, i32) {
    %c0_i32 = arith.constant 0 : i32
    %c0_i32_0 = arith.constant 0 : i32
    return %arg0, %c0_i32 : i32, i32
  }
  func.func @transform_1(%arg0: i32) -> (i32, i32) {
    %c0_i32 = arith.constant 0 : i32
    %c0_i32_0 = arith.constant 0 : i32
    %c0_i32_1 = arith.constant 0 : i32
    return %c0_i32, %c0_i32_0 : i32, i32
  }
  func.func @transform_2(%arg0: i32) -> (i32, i32) {
    %c0_i32 = arith.constant 0 : i32
    %c0_i32_0 = arith.constant 0 : i32
    %c0_i32_1 = arith.constant 0 : i32
    return %c0_i32, %c0_i32_0 : i32, i32
  }
  func.func @transform_3(%arg0: i32) -> (i32, i32) {
    %c0_i32 = arith.constant 0 : i32
    %c0_i32_0 = arith.constant 0 : i32
    %c0_i32_1 = arith.constant 0 : i32
    return %c0_i32, %c0_i32_0 : i32, i32
  }
  func.func @transform_4(%arg0: i32) -> (i32, i32) {
    %c0_i32 = arith.constant 0 : i32
    %c0_i32_0 = arith.constant 0 : i32
    return %arg0, %c0_i32 : i32, i32
  }
}

</mosaic_0001>

<bundles_post_ra>
// kernel: dual_conv_forward.5
= control target key start
LH: loop header
LB: loop body
LE: loop exit
PB: predicated region body
PF: predicated region fallthrough
CT: control target
= control target key end

     0   :  { %v96_v8 = vlaneseq  ;;  %vm363_vm0 = vcmask 64512   ;;  %s1051_s1 = inlined_call_operand.vmem [shape: f32[2,128], index: 1, kind: input, shape index: {}]   ;;  %s1052_s2 = inlined_call_operand.vmem [shape: f32[1,128], index: 2, kind: input, shape index: {}]   ;;  %s1053_s0 = inlined_call_operand.vmem [shape: f32[512,128], index: 0, kind: input, shape index: {}]   ;;  %s1054_s3 = inlined_call_operand.vmem [shape: f32[1,128], index: 3, kind: input, shape index: {}]   ;;  %s1055_s4 = inlined_call_operand.vmem [shape: f32[512,8], index: 4, kind: output, shape index: {}]  }
   0x1   :  { %v17_v0 = vld [vmem:[%s1051_s1] sm:$0x1]  ;;  %v19_v1 = vld [vmem:[%s1051_s1 + $0x1] sm:$0x1]  ;;  %v32_v16 = vld [vmem:[%s1053_s0 + $0x8] sm:$0xff] }
   0x2   :  { %v18_v2 = vmul.f32 0.001953125, %v17_v0  ;;  %v20_v3 = vmul.f32 0.001953125, %v19_v1  ;;  %v97_v9 = vshrl.u32 %v96_v8, 7  ;;  %v24_v10 = vld [vmem:[%s1052_s2] sm:$0x1]  ;;  %v33_v17 = vld [vmem:[%s1053_s0 + $0x10] sm:$0xff] }
   0x3   :  { %v28_v14 = vld [vmem:[%s1054_s3] sm:$0x1]  ;;  %v34_v18 = vld [vmem:[%s1053_s0 + $0x18] sm:$0xff]  ;;  %v36_v22 = vld [vmem:[%s1053_s0 + $0x28] sm:$0xff] }
   0x4   :  { %v21_v4 = vmul.f32 %v18_v2, %v18_v2  ;;  %v98_v11 = vsub.s32 0, %v97_v9  ;;  %v31_v15 = vld [vmem:[%s1053_s0] sm:$0xff]  ;;  %v37_v23 = vld [vmem:[%s1053_s0 + $0x30] sm:$0xff]  ;;  %v38_v24 = vld [vmem:[%s1053_s0 + $0x38] sm:$0xff] }
   0x5   :  { %v35_v19 = vld [vmem:[%s1053_s0 + $0x20] sm:$0xff]  ;;  %v40_v26 = vld [vmem:[%s1053_s0 + $0x48] sm:$0xff]  ;;  %v41_v27 = vld [vmem:[%s1053_s0 + $0x50] sm:$0xff] }
   0x6   :  { %v22_v5 = vsub.f32 %v20_v3, %v21_v4  ;;  %v39_v25 = vld [vmem:[%s1053_s0 + $0x40] sm:$0xff]  ;;  %v42_v32 = vld [vmem:[%s1053_s0 + $0x58] sm:$0xff]  ;;  %v44_v34 = vld [vmem:[%s1053_s0 + $0x68] sm:$0xff] }
   0x7   :  { %v43_v33 = vld [vmem:[%s1053_s0 + $0x60] sm:$0xff] }
   0x8   :  { %v23_v6 = vmax.f32 %v22_v5, 0.0 }
   0xa   :  { %v25_v7 = vadd.f32 1e-05, %v23_v6 }
   0xc   :  { %432 = vrsqrt.f32 %v25_v7  ;;  %v45_v7 = vld [vmem:[%s1053_s0 + $0x70] sm:$0xff] }
  0x16   :  { %v433_v12 = vpop.eup %432 }
  0x17   :  { %v27_v13 = vmul.f32 %v433_v12, %v24_v10  ;;  %v46_v12 = vld [vmem:[%s1053_s0 + $0x78] sm:$0xff] }
  0x19   :  { %v29_v20 = vmul.f32 %v27_v13, %v18_v2  ;;  %v486_v21 = vrot.slane %v27_v13, %v98_v11 }
  0x1b   :  { %v30_v28 = vsub.f32 %v28_v14, %v29_v20  ;;  %v101_v29 = vmul.f32 %v486_v21, %v31_v15  ;;  %v102_v30 = vmul.f32 %v486_v21, %v32_v16  ;;  %v103_v31 = vmul.f32 %v486_v21, %v33_v17  ;;  %v47_v17 = vld [vmem:[%s1053_s0 + $0x80] sm:$0xff] }
  0x1c   :  { %v104_v35 = vmul.f32 %v486_v21, %v34_v18  ;;  %v105_v36 = vmul.f32 %v486_v21, %v35_v19  ;;  %v106_v37 = vmul.f32 %v486_v21, %v36_v22  ;;  %v107_v38 = vmul.f32 %v486_v21, %v37_v23  ;;  %v48_v18 = vld [vmem:[%s1053_s0 + $0x88] sm:$0xff] }
  0x1d   :  { %v522_v39 = vrot.slane %v30_v28, %v98_v11  ;;  %v108_v40 = vmul.f32 %v486_v21, %v38_v24  ;;  %v109_v41 = vmul.f32 %v486_v21, %v39_v25  ;;  %v110_v42 = vmul.f32 %v486_v21, %v40_v26  ;;  %v49_v24 = vld [vmem:[%s1053_s0 + $0x90] sm:$0xff] }
  0x1e   :  { %v111_v43 = vmul.f32 %v486_v21, %v41_v27  ;;  %v112_v44 = vmul.f32 %v486_v21, %v42_v32  ;;  %v113_v45 = vmul.f32 %v486_v21, %v43_v33  ;;  %v114_v46 = vmul.f32 %v486_v21, %v44_v34  ;;  %v50_v33 = vld [vmem:[%s1053_s0 + $0x98] sm:$0xff]  ;;  %v51_v34 = vld [vmem:[%s1053_s0 + $0xa0] sm:$0xff] }
  0x1f   :  { %v171_v47 = vadd.f32 %v522_v39, %v101_v29  ;;  %v172_v48 = vadd.f32 %v522_v39, %v102_v30  ;;  %v173_v49 = vadd.f32 %v522_v39, %v103_v31  ;;  %v174_v50 = vadd.f32 %v522_v39, %v104_v35  ;;  %v52_v35 = vld [vmem:[%s1053_s0 + $0xa8] sm:$0xff] }
  0x20   :  { %v175_v51 = vadd.f32 %v522_v39, %v105_v36  ;;  %v176_v52 = vadd.f32 %v522_v39, %v106_v37  ;;  %v177_v53 = vadd.f32 %v522_v39, %v107_v38  ;;  %v178_v54 = vadd.f32 %v522_v39, %v108_v40 }
  0x21   :  { %v235_v55 = vmul.f32 0.01, %v171_v47  ;;  %v236_v56 = vmul.f32 0.01, %v172_v48  ;;  %v237_v57 = vmul.f32 0.01, %v173_v49  ;;  %v179_v58 = vadd.f32 %v522_v39, %v109_v41 }
  0x22   :  { %v238_v59 = vmul.f32 0.01, %v174_v50  ;;  %v239_v60 = vmul.f32 0.01, %v175_v51  ;;  %v240_v61 = vmul.f32 0.01, %v176_v52  ;;  %v180_v62 = vadd.f32 %v522_v39, %v110_v42 }
  0x23   :  { %v299_v63 = vmax.f32 %v171_v47, %v235_v55  ;;  %v300_v0 = vmax.f32 %v172_v48, %v236_v56  ;;  %v301_v1 = vmax.f32 %v173_v49, %v237_v57  ;;  %v241_v2 = vmul.f32 0.01, %v177_v53  ;;  %v53_v49 = vld [vmem:[%s1053_s0 + $0xb0] sm:$0xff] }
  0x24   :  { %v302_v3 = vmax.f32 %v174_v50, %v238_v59  ;;  %v303_v4 = vmax.f32 %v175_v51, %v239_v60  ;;  %v304_v5 = vmax.f32 %v176_v52, %v240_v61  ;;  %v242_v6 = vmul.f32 0.01, %v178_v54  ;;  %v55_v59 = vld [vmem:[%s1053_s0 + $0xc0] sm:$0xff]  ;;  %v56_v60 = vld [vmem:[%s1053_s0 + $0xc8] sm:$0xff] }
  0x25   :  { %364 = vst.msk [vmem:[%s1055_s4] sm:$0xff] %vm363_vm0, %v299_v63  ;;  %365 = vst.msk [vmem:[%s1055_s4 + $0x8] sm:$0xff] %vm363_vm0, %v300_v0  ;;  %v305_v8 = vmax.f32 %v177_v53, %v241_v2  ;;  %v243_v9 = vmul.f32 0.01, %v179_v58  ;;  %v244_v10 = vmul.f32 0.01, %v180_v62  ;;  %v181_v11 = vadd.f32 %v522_v39, %v111_v43 }
  0x26   :  { %366 = vst.msk [vmem:[%s1055_s4 + $0x10] sm:$0xff] %vm363_vm0, %v301_v1  ;;  %367 = vst.msk [vmem:[%s1055_s4 + $0x18] sm:$0xff] %vm363_vm0, %v302_v3  ;;  %v306_v13 = vmax.f32 %v178_v54, %v242_v6  ;;  %v182_v14 = vadd.f32 %v522_v39, %v112_v44  ;;  %v183_v15 = vadd.f32 %v522_v39, %v113_v45  ;;  %v54_v54 = vld [vmem:[%s1053_s0 + $0xb8] sm:$0xff]  ;;  %v57_v1 = vld [vmem:[%s1053_s0 + $0xd0] sm:$0xff] }
  0x27   :  { %368 = vst.msk [vmem:[%s1055_s4 + $0x20] sm:$0xff] %vm363_vm0, %v303_v4  ;;  %369 = vst.msk [vmem:[%s1055_s4 + $0x28] sm:$0xff] %vm363_vm0, %v304_v5  ;;  %v184_v16 = vadd.f32 %v522_v39, %v114_v46  ;;  %v307_v19 = vmax.f32 %v179_v58, %v243_v9  ;;  %v308_v20 = vmax.f32 %v180_v62, %v244_v10  ;;  %v245_v22 = vmul.f32 0.01, %v181_v11  ;;  %v58_v10 = vld [vmem:[%s1053_s0 + $0xd8] sm:$0xff] }
  0x28   :  { %370 = vst.msk [vmem:[%s1055_s4 + $0x30] sm:$0xff] %vm363_vm0, %v305_v8  ;;  %v115_v23 = vmul.f32 %v486_v21, %v45_v7  ;;  %371 = vst.msk [vmem:[%s1055_s4 + $0x38] sm:$0xff] %vm363_vm0, %v306_v13  ;;  %v246_v25 = vmul.f32 0.01, %v182_v14  ;;  %v247_v26 = vmul.f32 0.01, %v183_v15  ;;  %v116_v28 = vmul.f32 %v486_v21, %v46_v12 }
  0x29   :  { %v248_v27 = vmul.f32 0.01, %v184_v16  ;;  %372 = vst.msk [vmem:[%s1055_s4 + $0x40] sm:$0xff] %vm363_vm0, %v307_v19  ;;  %373 = vst.msk [vmem:[%s1055_s4 + $0x48] sm:$0xff] %vm363_vm0, %v308_v20  ;;  %v309_v29 = vmax.f32 %v181_v11, %v245_v22  ;;  %v117_v31 = vmul.f32 %v486_v21, %v47_v17  ;;  %v118_v32 = vmul.f32 %v486_v21, %v48_v18  ;;  %v59_v11 = vld [vmem:[%s1053_s0 + $0xe0] sm:$0xff]  ;;  %v60_v12 = vld [vmem:[%s1053_s0 + $0xe8] sm:$0xff] }
  0x2a   :  { %v185_v30 = vadd.f32 %v522_v39, %v115_v23  ;;  %v310_v36 = vmax.f32 %v182_v14, %v246_v25  ;;  %v311_v37 = vmax.f32 %v183_v15, %v247_v26  ;;  %v186_v40 = vadd.f32 %v522_v39, %v116_v28  ;;  %v61_v26 = vld [vmem:[%s1053_s0 + $0xf0] sm:$0xff] }
  0x2b   :  { %v312_v38 = vmax.f32 %v184_v16, %v248_v27  ;;  %374 = vst.msk [vmem:[%s1055_s4 + $0x50] sm:$0xff] %vm363_vm0, %v309_v29  ;;  %v187_v42 = vadd.f32 %v522_v39, %v117_v31  ;;  %v188_v43 = vadd.f32 %v522_v39, %v118_v32  ;;  %v119_v44 = vmul.f32 %v486_v21, %v49_v24  ;;  %v62_v31 = vld [vmem:[%s1053_s0 + $0xf8] sm:$0xff] }
  0x2c   :  { %v249_v41 = vmul.f32 0.01, %v185_v30  ;;  %375 = vst.msk [vmem:[%s1055_s4 + $0x58] sm:$0xff] %vm363_vm0, %v310_v36  ;;  %376 = vst.msk [vmem:[%s1055_s4 + $0x60] sm:$0xff] %vm363_vm0, %v311_v37  ;;  %v250_v45 = vmul.f32 0.01, %v186_v40  ;;  %v120_v46 = vmul.f32 %v486_v21, %v50_v33  ;;  %v121_v47 = vmul.f32 %v486_v21, %v51_v34 }
  0x2d   :  { %377 = vst.msk [vmem:[%s1055_s4 + $0x68] sm:$0xff] %vm363_vm0, %v312_v38  ;;  %v122_v48 = vmul.f32 %v486_v21, %v52_v35  ;;  %v251_v51 = vmul.f32 0.01, %v187_v42  ;;  %v252_v52 = vmul.f32 0.01, %v188_v43  ;;  %v189_v53 = vadd.f32 %v522_v39, %v119_v44  ;;  %v63_v36 = vld [vmem:[%s1053_s0 + $0x100] sm:$0xff] }
  0x2e   :  { %v313_v50 = vmax.f32 %v185_v30, %v249_v41  ;;  %v314_v55 = vmax.f32 %v186_v40, %v250_v45  ;;  %v190_v56 = vadd.f32 %v522_v39, %v120_v46  ;;  %v191_v57 = vadd.f32 %v522_v39, %v121_v47  ;;  %v64_v37 = vld [vmem:[%s1053_s0 + $0x108] sm:$0xff] }
  0x2f   :  { %v192_v58 = vadd.f32 %v522_v39, %v122_v48  ;;  %v315_v61 = vmax.f32 %v187_v42, %v251_v51  ;;  %v316_v62 = vmax.f32 %v188_v43, %v252_v52  ;;  %v253_v63 = vmul.f32 0.01, %v189_v53  ;;  %v65_v43 = vld [vmem:[%s1053_s0 + $0x110] sm:$0xff]  ;;  %v66_v52 = vld [vmem:[%s1053_s0 + $0x118] sm:$0xff] }
  0x30   :  { %378 = vst.msk [vmem:[%s1055_s4 + $0x70] sm:$0xff] %vm363_vm0, %v313_v50  ;;  %v123_v0 = vmul.f32 %v486_v21, %v53_v49  ;;  %379 = vst.msk [vmem:[%s1055_s4 + $0x78] sm:$0xff] %vm363_vm0, %v314_v55  ;;  %v254_v2 = vmul.f32 0.01, %v190_v56  ;;  %v255_v3 = vmul.f32 0.01, %v191_v57  ;;  %v124_v5 = vmul.f32 %v486_v21, %v54_v54 }
  0x31   :  { %v256_v4 = vmul.f32 0.01, %v192_v58  ;;  %380 = vst.msk [vmem:[%s1055_s4 + $0x80] sm:$0xff] %vm363_vm0, %v315_v61  ;;  %381 = vst.msk [vmem:[%s1055_s4 + $0x88] sm:$0xff] %vm363_vm0, %v316_v62  ;;  %v317_v6 = vmax.f32 %v189_v53, %v253_v63  ;;  %v125_v8 = vmul.f32 %v486_v21, %v55_v59  ;;  %v126_v9 = vmul.f32 %v486_v21, %v56_v60  ;;  %v67_v53 = vld [vmem:[%s1053_s0 + $0x120] sm:$0xff]  ;;  %v68_v54 = vld [vmem:[%s1053_s0 + $0x128] sm:$0xff] }
  0x32   :  { %v193_v7 = vadd.f32 %v522_v39, %v123_v0  ;;  %v318_v13 = vmax.f32 %v190_v56, %v254_v2  ;;  %v319_v14 = vmax.f32 %v191_v57, %v255_v3  ;;  %v194_v16 = vadd.f32 %v522_v39, %v124_v5  ;;  %v69_v3 = vld [vmem:[%s1053_s0 + $0x130] sm:$0xff] }
  0x33   :  { %v320_v15 = vmax.f32 %v192_v58, %v256_v4  ;;  %382 = vst.msk [vmem:[%s1055_s4 + $0x90] sm:$0xff] %vm363_vm0, %v317_v6  ;;  %v195_v18 = vadd.f32 %v522_v39, %v125_v8  ;;  %v196_v19 = vadd.f32 %v522_v39, %v126_v9  ;;  %v127_v20 = vmul.f32 %v486_v21, %v57_v1  ;;  %v70_v8 = vld [vmem:[%s1053_s0 + $0x138] sm:$0xff] }
  0x34   :  { %v257_v17 = vmul.f32 0.01, %v193_v7  ;;  %383 = vst.msk [vmem:[%s1055_s4 + $0x98] sm:$0xff] %vm363_vm0, %v318_v13  ;;  %384 = vst.msk [vmem:[%s1055_s4 + $0xa0] sm:$0xff] %vm363_vm0, %v319_v14  ;;  %v258_v22 = vmul.f32 0.01, %v194_v16  ;;  %v128_v23 = vmul.f32 %v486_v21, %v58_v10  ;;  %v129_v24 = vmul.f32 %v486_v21, %v59_v11 }
  0x35   :  { %385 = vst.msk [vmem:[%s1055_s4 + $0xa8] sm:$0xff] %vm363_vm0, %v320_v15  ;;  %v130_v25 = vmul.f32 %v486_v21, %v60_v12  ;;  %v259_v28 = vmul.f32 0.01, %v195_v18  ;;  %v260_v29 = vmul.f32 0.01, %v196_v19  ;;  %v197_v30 = vadd.f32 %v522_v39, %v127_v20  ;;  %v71_v13 = vld [vmem:[%s1053_s0 + $0x140] sm:$0xff] }
  0x36   :  { %v321_v27 = vmax.f32 %v193_v7, %v257_v17  ;;  %v322_v32 = vmax.f32 %v194_v16, %v258_v22  ;;  %v198_v33 = vadd.f32 %v522_v39, %v128_v23  ;;  %v199_v34 = vadd.f32 %v522_v39, %v129_v24  ;;  %v72_v14 = vld [vmem:[%s1053_s0 + $0x148] sm:$0xff] }
  0x37   :  { %v200_v35 = vadd.f32 %v522_v39, %v130_v25  ;;  %v323_v38 = vmax.f32 %v195_v18, %v259_v28  ;;  %v324_v40 = vmax.f32 %v196_v19, %v260_v29  ;;  %v261_v41 = vmul.f32 0.01, %v197_v30  ;;  %v73_v19 = vld [vmem:[%s1053_s0 + $0x150] sm:$0xff]  ;;  %v74_v29 = vld [vmem:[%s1053_s0 + $0x158] sm:$0xff] }
  0x38   :  { %386 = vst.msk [vmem:[%s1055_s4 + $0xb0] sm:$0xff] %vm363_vm0, %v321_v27  ;;  %v131_v42 = vmul.f32 %v486_v21, %v61_v26  ;;  %387 = vst.msk [vmem:[%s1055_s4 + $0xb8] sm:$0xff] %vm363_vm0, %v322_v32  ;;  %v262_v44 = vmul.f32 0.01, %v198_v33  ;;  %v263_v45 = vmul.f32 0.01, %v199_v34  ;;  %v132_v47 = vmul.f32 %v486_v21, %v62_v31 }
  0x39   :  { %v264_v46 = vmul.f32 0.01, %v200_v35  ;;  %388 = vst.msk [vmem:[%s1055_s4 + $0xc0] sm:$0xff] %vm363_vm0, %v323_v38  ;;  %389 = vst.msk [vmem:[%s1055_s4 + $0xc8] sm:$0xff] %vm363_vm0, %v324_v40  ;;  %v325_v48 = vmax.f32 %v197_v30, %v261_v41  ;;  %v133_v50 = vmul.f32 %v486_v21, %v63_v36  ;;  %v134_v51 = vmul.f32 %v486_v21, %v64_v37  ;;  %v75_v30 = vld [vmem:[%s1053_s0 + $0x160] sm:$0xff]  ;;  %v76_v31 = vld [vmem:[%s1053_s0 + $0x168] sm:$0xff] }
  0x3a   :  { %v201_v49 = vadd.f32 %v522_v39, %v131_v42  ;;  %v326_v55 = vmax.f32 %v198_v33, %v262_v44  ;;  %v327_v56 = vmax.f32 %v199_v34, %v263_v45  ;;  %v202_v58 = vadd.f32 %v522_v39, %v132_v47  ;;  %v77_v45 = vld [vmem:[%s1053_s0 + $0x170] sm:$0xff] }
  0x3b   :  { %v328_v57 = vmax.f32 %v200_v35, %v264_v46  ;;  %390 = vst.msk [vmem:[%s1055_s4 + $0xd0] sm:$0xff] %vm363_vm0, %v325_v48  ;;  %v203_v60 = vadd.f32 %v522_v39, %v133_v50  ;;  %v204_v61 = vadd.f32 %v522_v39, %v134_v51  ;;  %v135_v62 = vmul.f32 %v486_v21, %v65_v43  ;;  %v78_v50 = vld [vmem:[%s1053_s0 + $0x178] sm:$0xff] }
  0x3c   :  { %v265_v59 = vmul.f32 0.01, %v201_v49  ;;  %391 = vst.msk [vmem:[%s1055_s4 + $0xd8] sm:$0xff] %vm363_vm0, %v326_v55  ;;  %392 = vst.msk [vmem:[%s1055_s4 + $0xe0] sm:$0xff] %vm363_vm0, %v327_v56  ;;  %v266_v63 = vmul.f32 0.01, %v202_v58  ;;  %v136_v0 = vmul.f32 %v486_v21, %v66_v52  ;;  %v137_v1 = vmul.f32 %v486_v21, %v67_v53 }
  0x3d   :  { %393 = vst.msk [vmem:[%s1055_s4 + $0xe8] sm:$0xff] %vm363_vm0, %v328_v57  ;;  %v138_v2 = vmul.f32 %v486_v21, %v68_v54  ;;  %v267_v5 = vmul.f32 0.01, %v203_v60  ;;  %v268_v6 = vmul.f32 0.01, %v204_v61  ;;  %v205_v7 = vadd.f32 %v522_v39, %v135_v62  ;;  %v79_v55 = vld [vmem:[%s1053_s0 + $0x180] sm:$0xff] }
  0x3e   :  { %v329_v4 = vmax.f32 %v201_v49, %v265_v59  ;;  %v330_v9 = vmax.f32 %v202_v58, %v266_v63  ;;  %v206_v10 = vadd.f32 %v522_v39, %v136_v0  ;;  %v207_v11 = vadd.f32 %v522_v39, %v137_v1  ;;  %v80_v56 = vld [vmem:[%s1053_s0 + $0x188] sm:$0xff] }
  0x3f   :  { %v208_v12 = vadd.f32 %v522_v39, %v138_v2  ;;  %v331_v15 = vmax.f32 %v203_v60, %v267_v5  ;;  %v332_v16 = vmax.f32 %v204_v61, %v268_v6  ;;  %v269_v17 = vmul.f32 0.01, %v205_v7  ;;  %v81_v61 = vld [vmem:[%s1053_s0 + $0x190] sm:$0xff]  ;;  %v82_v6 = vld [vmem:[%s1053_s0 + $0x198] sm:$0xff] }
  0x40   :  { %394 = vst.msk [vmem:[%s1055_s4 + $0xf0] sm:$0xff] %vm363_vm0, %v329_v4  ;;  %v139_v18 = vmul.f32 %v486_v21, %v69_v3  ;;  %395 = vst.msk [vmem:[%s1055_s4 + $0xf8] sm:$0xff] %vm363_vm0, %v330_v9  ;;  %v270_v20 = vmul.f32 0.01, %v206_v10  ;;  %v271_v22 = vmul.f32 0.01, %v207_v11  ;;  %v140_v24 = vmul.f32 %v486_v21, %v70_v8 }
  0x41   :  { %v272_v23 = vmul.f32 0.01, %v208_v12  ;;  %396 = vst.msk [vmem:[%s1055_s4 + $0x100] sm:$0xff] %vm363_vm0, %v331_v15  ;;  %397 = vst.msk [vmem:[%s1055_s4 + $0x108] sm:$0xff] %vm363_vm0, %v332_v16  ;;  %v333_v25 = vmax.f32 %v205_v7, %v269_v17  ;;  %v141_v27 = vmul.f32 %v486_v21, %v71_v13  ;;  %v142_v28 = vmul.f32 %v486_v21, %v72_v14  ;;  %v83_v7 = vld [vmem:[%s1053_s0 + $0x1a0] sm:$0xff]  ;;  %v84_v8 = vld [vmem:[%s1053_s0 + $0x1a8] sm:$0xff] }
  0x42   :  { %v209_v26 = vadd.f32 %v522_v39, %v139_v18  ;;  %v334_v32 = vmax.f32 %v206_v10, %v270_v20  ;;  %v335_v33 = vmax.f32 %v207_v11, %v271_v22  ;;  %v210_v35 = vadd.f32 %v522_v39, %v140_v24  ;;  %v85_v22 = vld [vmem:[%s1053_s0 + $0x1b0] sm:$0xff] }
  0x43   :  { %v336_v34 = vmax.f32 %v208_v12, %v272_v23  ;;  %398 = vst.msk [vmem:[%s1055_s4 + $0x110] sm:$0xff] %vm363_vm0, %v333_v25  ;;  %v211_v37 = vadd.f32 %v522_v39, %v141_v27  ;;  %v212_v38 = vadd.f32 %v522_v39, %v142_v28  ;;  %v143_v40 = vmul.f32 %v486_v21, %v73_v19  ;;  %v86_v27 = vld [vmem:[%s1053_s0 + $0x1b8] sm:$0xff] }
  0x44   :  { %v273_v36 = vmul.f32 0.01, %v209_v26  ;;  %399 = vst.msk [vmem:[%s1055_s4 + $0x118] sm:$0xff] %vm363_vm0, %v334_v32  ;;  %400 = vst.msk [vmem:[%s1055_s4 + $0x120] sm:$0xff] %vm363_vm0, %v335_v33  ;;  %v274_v41 = vmul.f32 0.01, %v210_v35  ;;  %v144_v42 = vmul.f32 %v486_v21, %v74_v29  ;;  %v145_v43 = vmul.f32 %v486_v21, %v75_v30 }
  0x45   :  { %401 = vst.msk [vmem:[%s1055_s4 + $0x128] sm:$0xff] %vm363_vm0, %v336_v34  ;;  %v146_v44 = vmul.f32 %v486_v21, %v76_v31  ;;  %v275_v47 = vmul.f32 0.01, %v211_v37  ;;  %v276_v48 = vmul.f32 0.01, %v212_v38  ;;  %v213_v49 = vadd.f32 %v522_v39, %v143_v40  ;;  %v87_v32 = vld [vmem:[%s1053_s0 + $0x1c0] sm:$0xff] }
  0x46   :  { %v337_v46 = vmax.f32 %v209_v26, %v273_v36  ;;  %v338_v51 = vmax.f32 %v210_v35, %v274_v41  ;;  %v214_v52 = vadd.f32 %v522_v39, %v144_v42  ;;  %v215_v53 = vadd.f32 %v522_v39, %v145_v43  ;;  %v88_v33 = vld [vmem:[%s1053_s0 + $0x1c8] sm:$0xff] }
  0x47   :  { %v216_v54 = vadd.f32 %v522_v39, %v146_v44  ;;  %v339_v57 = vmax.f32 %v211_v37, %v275_v47  ;;  %v340_v58 = vmax.f32 %v212_v38, %v276_v48  ;;  %v277_v59 = vmul.f32 0.01, %v213_v49  ;;  %v89_v38 = vld [vmem:[%s1053_s0 + $0x1d0] sm:$0xff]  ;;  %v90_v48 = vld [vmem:[%s1053_s0 + $0x1d8] sm:$0xff] }
  0x48   :  { %402 = vst.msk [vmem:[%s1055_s4 + $0x130] sm:$0xff] %vm363_vm0, %v337_v46  ;;  %v147_v60 = vmul.f32 %v486_v21, %v77_v45  ;;  %403 = vst.msk [vmem:[%s1055_s4 + $0x138] sm:$0xff] %vm363_vm0, %v338_v51  ;;  %v278_v62 = vmul.f32 0.01, %v214_v52  ;;  %v279_v63 = vmul.f32 0.01, %v215_v53  ;;  %v148_v1 = vmul.f32 %v486_v21, %v78_v50 }
  0x49   :  { %v280_v0 = vmul.f32 0.01, %v216_v54  ;;  %404 = vst.msk [vmem:[%s1055_s4 + $0x140] sm:$0xff] %vm363_vm0, %v339_v57  ;;  %405 = vst.msk [vmem:[%s1055_s4 + $0x148] sm:$0xff] %vm363_vm0, %v340_v58  ;;  %v341_v2 = vmax.f32 %v213_v49, %v277_v59  ;;  %v149_v4 = vmul.f32 %v486_v21, %v79_v55  ;;  %v150_v5 = vmul.f32 %v486_v21, %v80_v56  ;;  %v91_v49 = vld [vmem:[%s1053_s0 + $0x1e0] sm:$0xff]  ;;  %v92_v50 = vld [vmem:[%s1053_s0 + $0x1e8] sm:$0xff] }
  0x4a   :  { %v217_v3 = vadd.f32 %v522_v39, %v147_v60  ;;  %v342_v9 = vmax.f32 %v214_v52, %v278_v62  ;;  %v343_v10 = vmax.f32 %v215_v53, %v279_v63  ;;  %v218_v12 = vadd.f32 %v522_v39, %v148_v1  ;;  %v93_v63 = vld [vmem:[%s1053_s0 + $0x1f0] sm:$0xff] }
  0x4b   :  { %v344_v11 = vmax.f32 %v216_v54, %v280_v0  ;;  %406 = vst.msk [vmem:[%s1055_s4 + $0x150] sm:$0xff] %vm363_vm0, %v341_v2  ;;  %v219_v14 = vadd.f32 %v522_v39, %v149_v4  ;;  %v220_v15 = vadd.f32 %v522_v39, %v150_v5  ;;  %v151_v16 = vmul.f32 %v486_v21, %v81_v61  ;;  %v94_v4 = vld [vmem:[%s1053_s0 + $0x1f8] sm:$0xff] }
  0x4c   :  { %v281_v13 = vmul.f32 0.01, %v217_v3  ;;  %407 = vst.msk [vmem:[%s1055_s4 + $0x158] sm:$0xff] %vm363_vm0, %v342_v9  ;;  %408 = vst.msk [vmem:[%s1055_s4 + $0x160] sm:$0xff] %vm363_vm0, %v343_v10  ;;  %v282_v17 = vmul.f32 0.01, %v218_v12  ;;  %v152_v18 = vmul.f32 %v486_v21, %v82_v6  ;;  %v153_v19 = vmul.f32 %v486_v21, %v83_v7 }
  0x4d   :  { %409 = vst.msk [vmem:[%s1055_s4 + $0x168] sm:$0xff] %vm363_vm0, %v344_v11  ;;  %v154_v20 = vmul.f32 %v486_v21, %v84_v8  ;;  %v283_v24 = vmul.f32 0.01, %v219_v14  ;;  %v284_v25 = vmul.f32 0.01, %v220_v15  ;;  %v221_v26 = vadd.f32 %v522_v39, %v151_v16 }
  0x4e   :  { %v345_v23 = vmax.f32 %v217_v3, %v281_v13  ;;  %v346_v28 = vmax.f32 %v218_v12, %v282_v17  ;;  %v222_v29 = vadd.f32 %v522_v39, %v152_v18  ;;  %v223_v30 = vadd.f32 %v522_v39, %v153_v19 }
  0x4f   :  { %v224_v31 = vadd.f32 %v522_v39, %v154_v20  ;;  %v347_v34 = vmax.f32 %v219_v14, %v283_v24  ;;  %v348_v35 = vmax.f32 %v220_v15, %v284_v25  ;;  %v285_v36 = vmul.f32 0.01, %v221_v26 }
  0x50   :  { %410 = vst.msk [vmem:[%s1055_s4 + $0x170] sm:$0xff] %vm363_vm0, %v345_v23  ;;  %v155_v37 = vmul.f32 %v486_v21, %v85_v22  ;;  %411 = vst.msk [vmem:[%s1055_s4 + $0x178] sm:$0xff] %vm363_vm0, %v346_v28  ;;  %v286_v40 = vmul.f32 0.01, %v222_v29  ;;  %v287_v41 = vmul.f32 0.01, %v223_v30  ;;  %v156_v43 = vmul.f32 %v486_v21, %v86_v27 }
  0x51   :  { %v288_v42 = vmul.f32 0.01, %v224_v31  ;;  %412 = vst.msk [vmem:[%s1055_s4 + $0x180] sm:$0xff] %vm363_vm0, %v347_v34  ;;  %413 = vst.msk [vmem:[%s1055_s4 + $0x188] sm:$0xff] %vm363_vm0, %v348_v35  ;;  %v349_v44 = vmax.f32 %v221_v26, %v285_v36  ;;  %v157_v46 = vmul.f32 %v486_v21, %v87_v32  ;;  %v158_v47 = vmul.f32 %v486_v21, %v88_v33 }
  0x52   :  { %v225_v45 = vadd.f32 %v522_v39, %v155_v37  ;;  %v350_v51 = vmax.f32 %v222_v29, %v286_v40  ;;  %v351_v52 = vmax.f32 %v223_v30, %v287_v41  ;;  %v226_v54 = vadd.f32 %v522_v39, %v156_v43 }
  0x53   :  { %v352_v53 = vmax.f32 %v224_v31, %v288_v42  ;;  %414 = vst.msk [vmem:[%s1055_s4 + $0x190] sm:$0xff] %vm363_vm0, %v349_v44  ;;  %v227_v56 = vadd.f32 %v522_v39, %v157_v46  ;;  %v228_v57 = vadd.f32 %v522_v39, %v158_v47  ;;  %v159_v58 = vmul.f32 %v486_v21, %v89_v38 }
  0x54   :  { %v289_v55 = vmul.f32 0.01, %v225_v45  ;;  %415 = vst.msk [vmem:[%s1055_s4 + $0x198] sm:$0xff] %vm363_vm0, %v350_v51  ;;  %416 = vst.msk [vmem:[%s1055_s4 + $0x1a0] sm:$0xff] %vm363_vm0, %v351_v52  ;;  %v290_v59 = vmul.f32 0.01, %v226_v54  ;;  %v160_v60 = vmul.f32 %v486_v21, %v90_v48  ;;  %v161_v61 = vmul.f32 %v486_v21, %v91_v49 }
  0x55   :  { %417 = vst.msk [vmem:[%s1055_s4 + $0x1a8] sm:$0xff] %vm363_vm0, %v352_v53  ;;  %v162_v62 = vmul.f32 %v486_v21, %v92_v50  ;;  %v291_v1 = vmul.f32 0.01, %v227_v56  ;;  %v292_v2 = vmul.f32 0.01, %v228_v57  ;;  %v229_v3 = vadd.f32 %v522_v39, %v159_v58 }
  0x56   :  { %v353_v0 = vmax.f32 %v225_v45, %v289_v55  ;;  %v354_v5 = vmax.f32 %v226_v54, %v290_v59  ;;  %v230_v6 = vadd.f32 %v522_v39, %v160_v60  ;;  %v231_v7 = vadd.f32 %v522_v39, %v161_v61 }
  0x57   :  { %v232_v8 = vadd.f32 %v522_v39, %v162_v62  ;;  %v355_v9 = vmax.f32 %v227_v56, %v291_v1  ;;  %v356_v10 = vmax.f32 %v228_v57, %v292_v2  ;;  %v293_v11 = vmul.f32 0.01, %v229_v3 }
  0x58   :  { %418 = vst.msk [vmem:[%s1055_s4 + $0x1b0] sm:$0xff] %vm363_vm0, %v353_v0  ;;  %v163_v12 = vmul.f32 %v486_v21, %v93_v63  ;;  %419 = vst.msk [vmem:[%s1055_s4 + $0x1b8] sm:$0xff] %vm363_vm0, %v354_v5  ;;  %v294_v13 = vmul.f32 0.01, %v230_v6  ;;  %v295_v14 = vmul.f32 0.01, %v231_v7  ;;  %v164_v16 = vmul.f32 %v486_v21, %v94_v4 }
  0x59   :  { %v296_v15 = vmul.f32 0.01, %v232_v8  ;;  %420 = vst.msk [vmem:[%s1055_s4 + $0x1c0] sm:$0xff] %vm363_vm0, %v355_v9  ;;  %421 = vst.msk [vmem:[%s1055_s4 + $0x1c8] sm:$0xff] %vm363_vm0, %v356_v10  ;;  %v357_v17 = vmax.f32 %v229_v3, %v293_v11 }
  0x5a   :  { %v233_v18 = vadd.f32 %v522_v39, %v163_v12  ;;  %v358_v19 = vmax.f32 %v230_v6, %v294_v13  ;;  %v359_v20 = vmax.f32 %v231_v7, %v295_v14  ;;  %v234_v23 = vadd.f32 %v522_v39, %v164_v16 }
  0x5b   :  { %v360_v22 = vmax.f32 %v232_v8, %v296_v15  ;;  %422 = vst.msk [vmem:[%s1055_s4 + $0x1d0] sm:$0xff] %vm363_vm0, %v357_v17 }
  0x5c   :  { %v297_v21 = vmul.f32 0.01, %v233_v18  ;;  %423 = vst.msk [vmem:[%s1055_s4 + $0x1d8] sm:$0xff] %vm363_vm0, %v358_v19  ;;  %424 = vst.msk [vmem:[%s1055_s4 + $0x1e0] sm:$0xff] %vm363_vm0, %v359_v20  ;;  %v298_v39 = vmul.f32 0.01, %v234_v23 }
  0x5d   :  { %425 = vst.msk [vmem:[%s1055_s4 + $0x1e8] sm:$0xff] %vm363_vm0, %v360_v22 }
  0x5e   :  { %v361_v24 = vmax.f32 %v233_v18, %v297_v21  ;;  %v362_v25 = vmax.f32 %v234_v23, %v298_v39 }
  0x60   :  { %426 = vst.msk [vmem:[%s1055_s4 + $0x1f0] sm:$0xff] %vm363_vm0, %v361_v24  ;;  %427 = vst.msk [vmem:[%s1055_s4 + $0x1f8] sm:$0xff] %vm363_vm0, %v362_v25 }

// kernel: dual_conv_forward.4
= control target key start
LH: loop header
LB: loop body
LE: loop exit
PB: predicated region body
PF: predicated region fallthrough
CT: control target
= control target key end

     0   :  { %v1124_v40 = vmov 0.0   ;;  %vm895_vm0 = vcmask 1040384   ;;  %s1658_s1 = inlined_call_operand.vmem [shape: bf16[128,128], index: 1, kind: input, shape index: {}]   ;;  %s1659_s0 = inlined_call_operand.vmem [shape: bf16[512,128], index: 0, kind: input, shape index: {}]   ;;  %s1660_s3 = inlined_call_operand.vmem [shape: f32[2,128], index: 3, kind: output, shape index: {1}]   ;;  %s1661_s2 = inlined_call_operand.vmem [shape: f32[512,128], index: 2, kind: output, shape index: {0}]  }
   0x1   :  { %v1084_v0 = vld [vmem:[%s1658_s1] sm:$0xff]   ;;  %v1085_v1 = vld [vmem:[%s1658_s1 + $0x8] sm:$0xff]   ;;  %v1086_v2 = vld [vmem:[%s1658_s1 + $0x10] sm:$0xff]   ;;  %691 = vst [vmem:[%s1660_s3] sm:$0x3] %v1124_v40 }
   0x2   :  { %987 = vmatprep.subr.bf16.mxu0 %v1084_v0  ;;  %1067 = vmatprep.subr.bf16.mxu1 %v1084_v0  ;;  %v1087_v3 = vld [vmem:[%s1658_s1 + $0x18] sm:$0xff]   ;;  %v1092_v4 = vld [vmem:[%s1659_s0] sm:$0xff]   ;;  %v1089_v6 = vld [vmem:[%s1658_s1 + $0x28] sm:$0xff]  }
   0x3   :  { %988 = vmatpush3.bf16.msra.mxu0 %v1084_v0  ;;  %1075 = vmatpush3.bf16.msra.mxu1 %v1084_v0  ;;  %v1088_v5 = vld [vmem:[%s1658_s1 + $0x20] sm:$0xff]   ;;  %v1090_v7 = vld [vmem:[%s1658_s1 + $0x30] sm:$0xff]   ;;  %v1091_v8 = vld [vmem:[%s1658_s1 + $0x38] sm:$0xff]  }
   0x4   :  { %989 = vmatprep.subr.bf16.mxu0 %v1085_v1  ;;  %1068 = vmatprep.subr.bf16.mxu1 %v1085_v1  ;;  %v1108_v9 = vld [vmem:[%s1659_s0 + $0x80] sm:$0xff]   ;;  %v1093_v10 = vld [vmem:[%s1659_s0 + $0x8] sm:$0xff]   ;;  %v1094_v11 = vld [vmem:[%s1659_s0 + $0x10] sm:$0xff]  }
   0x5   :  { %1003 = vmatprep.mubr.bf16.mxu0 %v1092_v4  ;;  %1035 = vmatprep.mubr.bf16.mxu1 %v1108_v9  ;;  %v1109_v12 = vld [vmem:[%s1659_s0 + $0x88] sm:$0xff]   ;;  %v1110_v13 = vld [vmem:[%s1659_s0 + $0x90] sm:$0xff]   ;;  %v1095_v14 = vld [vmem:[%s1659_s0 + $0x18] sm:$0xff]  }
   0x6   :  { %v1096_v15 = vld [vmem:[%s1659_s0 + $0x20] sm:$0xff]   ;;  %v1111_v16 = vld [vmem:[%s1659_s0 + $0x98] sm:$0xff]   ;;  %v1097_v18 = vld [vmem:[%s1659_s0 + $0x28] sm:$0xff]  }
   0x7   :  { %990 = vmatpush3.bf16.msra.mxu0 %v1085_v1  ;;  %1076 = vmatpush3.bf16.msra.mxu1 %v1085_v1  ;;  %v1112_v17 = vld [vmem:[%s1659_s0 + $0xa0] sm:$0xff]   ;;  %v1113_v19 = vld [vmem:[%s1659_s0 + $0xa8] sm:$0xff]   ;;  %v1098_v20 = vld [vmem:[%s1659_s0 + $0x30] sm:$0xff]  }
   0x8   :  { %991 = vmatprep.subr.bf16.mxu0 %v1086_v2  ;;  %1069 = vmatprep.subr.bf16.mxu1 %v1086_v2  ;;  %v1114_v21 = vld [vmem:[%s1659_s0 + $0xb0] sm:$0xff]   ;;  %v1099_v22 = vld [vmem:[%s1659_s0 + $0x38] sm:$0xff]   ;;  %v1100_v24 = vld [vmem:[%s1659_s0 + $0x40] sm:$0xff]  }
   0x9   :  { %v1115_v23 = vld [vmem:[%s1659_s0 + $0xb8] sm:$0xff]   ;;  %v1116_v25 = vld [vmem:[%s1659_s0 + $0xc0] sm:$0xff]   ;;  %v1101_v26 = vld [vmem:[%s1659_s0 + $0x48] sm:$0xff]  }
   0xa   :  { %v1117_v27 = vld [vmem:[%s1659_s0 + $0xc8] sm:$0xff]   ;;  %v1102_v28 = vld [vmem:[%s1659_s0 + $0x50] sm:$0xff]   ;;  %v1103_v30 = vld [vmem:[%s1659_s0 + $0x58] sm:$0xff]  }
   0xb   :  { %992 = vmatpush3.bf16.msra.mxu0 %v1086_v2  ;;  %1077 = vmatpush3.bf16.msra.mxu1 %v1086_v2  ;;  %v1118_v29 = vld [vmem:[%s1659_s0 + $0xd0] sm:$0xff]   ;;  %v1119_v31 = vld [vmem:[%s1659_s0 + $0xd8] sm:$0xff]   ;;  %v1104_v32 = vld [vmem:[%s1659_s0 + $0x60] sm:$0xff]  }
   0xc   :  { %993 = vmatprep.subr.bf16.mxu0 %v1087_v3  ;;  %1070 = vmatprep.subr.bf16.mxu1 %v1087_v3  ;;  %v1120_v33 = vld [vmem:[%s1659_s0 + $0xe0] sm:$0xff]   ;;  %v1105_v34 = vld [vmem:[%s1659_s0 + $0x68] sm:$0xff]   ;;  %v1106_v36 = vld [vmem:[%s1659_s0 + $0x70] sm:$0xff]  }
   0xd   :  { %v1121_v35 = vld [vmem:[%s1659_s0 + $0xe8] sm:$0xff]   ;;  %v1122_v37 = vld [vmem:[%s1659_s0 + $0xf0] sm:$0xff]   ;;  %v1107_v38 = vld [vmem:[%s1659_s0 + $0x78] sm:$0xff]  }
   0xe   :  { %v1123_v39 = vld [vmem:[%s1659_s0 + $0xf8] sm:$0xff]  }
   0xf   :  { %994 = vmatpush3.bf16.msra.mxu0 %v1087_v3  ;;  %1078 = vmatpush3.bf16.msra.mxu1 %v1087_v3 }
  0x10   :  { %995 = vmatprep.subr.bf16.mxu0 %v1088_v5  ;;  %1071 = vmatprep.subr.bf16.mxu1 %v1088_v5 }
  0x13   :  { %996 = vmatpush3.bf16.msra.mxu0 %v1088_v5  ;;  %1079 = vmatpush3.bf16.msra.mxu1 %v1088_v5 }
  0x14   :  { %997 = vmatprep.subr.bf16.mxu0 %v1089_v6  ;;  %1072 = vmatprep.subr.bf16.mxu1 %v1089_v6 }
  0x17   :  { %998 = vmatpush3.bf16.msra.mxu0 %v1089_v6  ;;  %1080 = vmatpush3.bf16.msra.mxu1 %v1089_v6 }
  0x18   :  { %999 = vmatprep.subr.bf16.mxu0 %v1090_v7  ;;  %1073 = vmatprep.subr.bf16.mxu1 %v1090_v7 }
  0x1b   :  { %1000 = vmatpush3.bf16.msra.mxu0 %v1090_v7  ;;  %1081 = vmatpush3.bf16.msra.mxu1 %v1090_v7 }
  0x1c   :  { %1001 = vmatprep.subr.bf16.mxu0 %v1091_v8  ;;  %1074 = vmatprep.subr.bf16.mxu1 %v1091_v8 }
  0x1f   :  { %1002 = vmatpush3.bf16.msra.mxu0 %v1091_v8  ;;  %1082 = vmatpush3.bf16.msra.mxu1 %v1091_v8 }
  0x22   :  { %1004 = vmatmul.mubr.bf16.vlgmr.msra.gmra.mrb[0].mxu0 %v1093_v10  ;;  %1036 = vmatmul.mubr.bf16.vlgmr.msra.gmra.mrb[0].mxu1 %v1109_v12 }
  0x23   :  { %1007 = vmatprep.mubr.bf16.mxu0 %v1094_v11  ;;  %1039 = vmatprep.mubr.bf16.mxu1 %v1110_v13 }
  0x2a   :  { %1008 = vmatmul.mubr.bf16.gmra.mrb[4].mxu0 %v1095_v14  ;;  %1040 = vmatmul.mubr.bf16.gmra.mrb[4].mxu1 %v1111_v16 }
  0x2b   :  { %1011 = vmatprep.mubr.bf16.mxu0 %v1096_v15  ;;  %1043 = vmatprep.mubr.bf16.mxu1 %v1112_v17 }
  0x32   :  { %1012 = vmatmul.mubr.bf16.gmra.mrb[8].mxu0 %v1097_v18  ;;  %1044 = vmatmul.mubr.bf16.gmra.mrb[8].mxu1 %v1113_v19 }
  0x33   :  { %1015 = vmatprep.mubr.bf16.mxu0 %v1098_v20  ;;  %1047 = vmatprep.mubr.bf16.mxu1 %v1114_v21 }
  0x3a   :  { %1016 = vmatmul.mubr.bf16.gmra.mrb[12].mxu0 %v1099_v22  ;;  %1048 = vmatmul.mubr.bf16.gmra.mrb[12].mxu1 %v1115_v23 }
  0x3b   :  { %1019 = vmatprep.mubr.bf16.mxu0 %v1100_v24  ;;  %1051 = vmatprep.mubr.bf16.mxu1 %v1116_v25 }
  0x42   :  { %1020 = vmatmul.mubr.bf16.gmra.mrb[16].mxu0 %v1101_v26  ;;  %1052 = vmatmul.mubr.bf16.gmra.mrb[16].mxu1 %v1117_v27 }
  0x43   :  { %1023 = vmatprep.mubr.bf16.mxu0 %v1102_v28  ;;  %1055 = vmatprep.mubr.bf16.mxu1 %v1118_v29 }
  0x4a   :  { %1024 = vmatmul.mubr.bf16.gmra.mrb[20].mxu0 %v1103_v30  ;;  %1056 = vmatmul.mubr.bf16.gmra.mrb[20].mxu1 %v1119_v31 }
  0x4b   :  { %1027 = vmatprep.mubr.bf16.mxu0 %v1104_v32  ;;  %1059 = vmatprep.mubr.bf16.mxu1 %v1120_v33 }
  0x52   :  { %1028 = vmatmul.mubr.bf16.gmra.mrb[24].mxu0 %v1105_v34  ;;  %1060 = vmatmul.mubr.bf16.gmra.mrb[24].mxu1 %v1121_v35 }
  0x53   :  { %1031 = vmatprep.mubr.bf16.mxu0 %v1106_v36  ;;  %1063 = vmatprep.mubr.bf16.mxu1 %v1122_v37 }
  0x5a   :  { %1032 = vmatmul.mubr.bf16.gmra.mrb[28].mxu0 %v1107_v38  ;;  %1064 = vmatmul.mubr.bf16.gmra.mrb[28].mxu1 %v1123_v39 }
  0xf5   :  { %v1005_v41 = vpop.f32.mrb[0].mxu0  ;;  %v1268_v42 = vpop.f32.mrb[0].mxu1 }
  0xf6   :  { %625 = vst [vmem:[%s1661_s2 + $0x10] sm:$0xff] %v1005_v41  ;;  %v368_v43 = vpop.f32.mrb[1].mxu0  ;;  %657 = vst [vmem:[%s1661_s2 + $0x110] sm:$0xff] %v1268_v42  ;;  %v1277_v44 = vpop.f32.mrb[1].mxu1  ;;  %v763_v52 = vmul.f32 %v1005_v41, %v1005_v41 }
  0xf7   :  { %623 = vst [vmem:[%s1661_s2] sm:$0xff] %v368_v43  ;;  %v1006_v45 = vpop.f32.mrb[2].mxu0  ;;  %655 = vst [vmem:[%s1661_s2 + $0x100] sm:$0xff] %v1277_v44  ;;  %v1286_v46 = vpop.f32.mrb[2].mxu1  ;;  %v761_v49 = vmul.f32 %v368_v43, %v368_v43 }
  0xf8   :  { %626 = vst [vmem:[%s1661_s2 + $0x18] sm:$0xff] %v1006_v45  ;;  %v371_v47 = vpop.f32.mrb[3].mxu0  ;;  %658 = vst [vmem:[%s1661_s2 + $0x118] sm:$0xff] %v1286_v46  ;;  %v1295_v48 = vpop.f32.mrb[3].mxu1  ;;  %v764_v55 = vmul.f32 %v1006_v45, %v1006_v45 }
  0xf9   :  { %624 = vst [vmem:[%s1661_s2 + $0x8] sm:$0xff] %v371_v47  ;;  %v692_v50 = vadd.f32 %v371_v47, %v368_v43  ;;  %v762_v51 = vmul.f32 %v371_v47, %v371_v47  ;;  %656 = vst [vmem:[%s1661_s2 + $0x108] sm:$0xff] %v1295_v48 }
  0xfb   :  { %v693_v53 = vadd.f32 %v1005_v41, %v692_v50  ;;  %v825_v54 = vadd.f32 %v762_v51, %v761_v49 }
  0xfd   :  { %v826_v56 = vadd.f32 %v825_v54, %v763_v52  ;;  %v1009_v57 = vpop.f32.mrb[4].mxu0  ;;  %v694_v58 = vadd.f32 %v1006_v45, %v693_v53  ;;  %v1304_v59 = vpop.f32.mrb[4].mxu1 }
  0xfe   :  { %629 = vst [vmem:[%s1661_s2 + $0x30] sm:$0xff] %v1009_v57  ;;  %v384_v60 = vpop.f32.mrb[5].mxu0  ;;  %661 = vst [vmem:[%s1661_s2 + $0x130] sm:$0xff] %v1304_v59  ;;  %v1313_v61 = vpop.f32.mrb[5].mxu1  ;;  %v767_v8 = vmul.f32 %v1009_v57, %v1009_v57 }
  0xff   :  { %627 = vst [vmem:[%s1661_s2 + $0x20] sm:$0xff] %v384_v60  ;;  %v695_v62 = vadd.f32 %v694_v58, %v384_v60  ;;  %v765_v63 = vmul.f32 %v384_v60, %v384_v60  ;;  %v827_v0 = vadd.f32 %v826_v56, %v764_v55  ;;  %v1010_v1 = vpop.f32.mrb[6].mxu0  ;;  %659 = vst [vmem:[%s1661_s2 + $0x120] sm:$0xff] %v1313_v61  ;;  %v1322_v2 = vpop.f32.mrb[6].mxu1 }
 0x100   :  { %630 = vst [vmem:[%s1661_s2 + $0x38] sm:$0xff] %v1010_v1  ;;  %v387_v3 = vpop.f32.mrb[7].mxu0  ;;  %662 = vst [vmem:[%s1661_s2 + $0x138] sm:$0xff] %v1322_v2  ;;  %v1331_v4 = vpop.f32.mrb[7].mxu1  ;;  %v768_v11 = vmul.f32 %v1010_v1, %v1010_v1 }
 0x101   :  { %v828_v5 = vadd.f32 %v827_v0, %v765_v63  ;;  %628 = vst [vmem:[%s1661_s2 + $0x28] sm:$0xff] %v387_v3  ;;  %v696_v6 = vadd.f32 %v695_v62, %v387_v3  ;;  %v766_v7 = vmul.f32 %v387_v3, %v387_v3  ;;  %660 = vst [vmem:[%s1661_s2 + $0x128] sm:$0xff] %v1331_v4 }
 0x103   :  { %v697_v9 = vadd.f32 %v1009_v57, %v696_v6  ;;  %v829_v10 = vadd.f32 %v828_v5, %v766_v7 }
 0x105   :  { %v830_v12 = vadd.f32 %v829_v10, %v767_v8  ;;  %v1013_v13 = vpop.f32.mrb[8].mxu0  ;;  %v698_v14 = vadd.f32 %v1010_v1, %v697_v9  ;;  %v1340_v15 = vpop.f32.mrb[8].mxu1 }
 0x106   :  { %633 = vst [vmem:[%s1661_s2 + $0x50] sm:$0xff] %v1013_v13  ;;  %v400_v16 = vpop.f32.mrb[9].mxu0  ;;  %665 = vst [vmem:[%s1661_s2 + $0x150] sm:$0xff] %v1340_v15  ;;  %v1349_v17 = vpop.f32.mrb[9].mxu1  ;;  %v771_v28 = vmul.f32 %v1013_v13, %v1013_v13 }
 0x107   :  { %631 = vst [vmem:[%s1661_s2 + $0x40] sm:$0xff] %v400_v16  ;;  %v699_v18 = vadd.f32 %v698_v14, %v400_v16  ;;  %v769_v19 = vmul.f32 %v400_v16, %v400_v16  ;;  %v831_v20 = vadd.f32 %v830_v12, %v768_v11  ;;  %v1014_v21 = vpop.f32.mrb[10].mxu0  ;;  %663 = vst [vmem:[%s1661_s2 + $0x140] sm:$0xff] %v1349_v17  ;;  %v1358_v22 = vpop.f32.mrb[10].mxu1 }
 0x108   :  { %634 = vst [vmem:[%s1661_s2 + $0x58] sm:$0xff] %v1014_v21  ;;  %v403_v23 = vpop.f32.mrb[11].mxu0  ;;  %666 = vst [vmem:[%s1661_s2 + $0x158] sm:$0xff] %v1358_v22  ;;  %v1367_v24 = vpop.f32.mrb[11].mxu1  ;;  %v772_v31 = vmul.f32 %v1014_v21, %v1014_v21 }
 0x109   :  { %v832_v25 = vadd.f32 %v831_v20, %v769_v19  ;;  %632 = vst [vmem:[%s1661_s2 + $0x48] sm:$0xff] %v403_v23  ;;  %v700_v26 = vadd.f32 %v699_v18, %v403_v23  ;;  %v770_v27 = vmul.f32 %v403_v23, %v403_v23  ;;  %664 = vst [vmem:[%s1661_s2 + $0x148] sm:$0xff] %v1367_v24 }
 0x10b   :  { %v701_v29 = vadd.f32 %v1013_v13, %v700_v26  ;;  %v833_v30 = vadd.f32 %v832_v25, %v770_v27 }
 0x10d   :  { %v834_v32 = vadd.f32 %v833_v30, %v771_v28  ;;  %v1017_v33 = vpop.f32.mrb[12].mxu0  ;;  %v702_v34 = vadd.f32 %v1014_v21, %v701_v29  ;;  %v1376_v35 = vpop.f32.mrb[12].mxu1 }
 0x10e   :  { %637 = vst [vmem:[%s1661_s2 + $0x70] sm:$0xff] %v1017_v33  ;;  %v416_v36 = vpop.f32.mrb[13].mxu0  ;;  %669 = vst [vmem:[%s1661_s2 + $0x170] sm:$0xff] %v1376_v35  ;;  %v1385_v37 = vpop.f32.mrb[13].mxu1  ;;  %v775_v52 = vmul.f32 %v1017_v33, %v1017_v33 }
 0x10f   :  { %635 = vst [vmem:[%s1661_s2 + $0x60] sm:$0xff] %v416_v36  ;;  %v703_v38 = vadd.f32 %v702_v34, %v416_v36  ;;  %v773_v39 = vmul.f32 %v416_v36, %v416_v36  ;;  %v835_v40 = vadd.f32 %v834_v32, %v772_v31  ;;  %v1018_v41 = vpop.f32.mrb[14].mxu0  ;;  %667 = vst [vmem:[%s1661_s2 + $0x160] sm:$0xff] %v1385_v37  ;;  %v1394_v43 = vpop.f32.mrb[14].mxu1 }
 0x110   :  { %638 = vst [vmem:[%s1661_s2 + $0x78] sm:$0xff] %v1018_v41  ;;  %v419_v45 = vpop.f32.mrb[15].mxu0  ;;  %670 = vst [vmem:[%s1661_s2 + $0x178] sm:$0xff] %v1394_v43  ;;  %v1403_v47 = vpop.f32.mrb[15].mxu1  ;;  %v776_v55 = vmul.f32 %v1018_v41, %v1018_v41 }
 0x111   :  { %v836_v49 = vadd.f32 %v835_v40, %v773_v39  ;;  %636 = vst [vmem:[%s1661_s2 + $0x68] sm:$0xff] %v419_v45  ;;  %v704_v50 = vadd.f32 %v703_v38, %v419_v45  ;;  %v774_v51 = vmul.f32 %v419_v45, %v419_v45  ;;  %668 = vst [vmem:[%s1661_s2 + $0x168] sm:$0xff] %v1403_v47 }
 0x113   :  { %v705_v53 = vadd.f32 %v1017_v33, %v704_v50  ;;  %v837_v54 = vadd.f32 %v836_v49, %v774_v51 }
 0x115   :  { %v838_v56 = vadd.f32 %v837_v54, %v775_v52  ;;  %v1021_v57 = vpop.f32.mrb[16].mxu0  ;;  %v706_v58 = vadd.f32 %v1018_v41, %v705_v53  ;;  %v1412_v60 = vpop.f32.mrb[16].mxu1 }
 0x116   :  { %641 = vst [vmem:[%s1661_s2 + $0x90] sm:$0xff] %v1021_v57  ;;  %v432_v62 = vpop.f32.mrb[17].mxu0  ;;  %673 = vst [vmem:[%s1661_s2 + $0x190] sm:$0xff] %v1412_v60  ;;  %v1421_v63 = vpop.f32.mrb[17].mxu1  ;;  %v779_v12 = vmul.f32 %v1021_v57, %v1021_v57 }
 0x117   :  { %639 = vst [vmem:[%s1661_s2 + $0x80] sm:$0xff] %v432_v62  ;;  %v707_v0 = vadd.f32 %v706_v58, %v432_v62  ;;  %v777_v1 = vmul.f32 %v432_v62, %v432_v62  ;;  %v839_v3 = vadd.f32 %v838_v56, %v776_v55  ;;  %v1022_v5 = vpop.f32.mrb[18].mxu0  ;;  %671 = vst [vmem:[%s1661_s2 + $0x180] sm:$0xff] %v1421_v63  ;;  %v1430_v6 = vpop.f32.mrb[18].mxu1 }
 0x118   :  { %642 = vst [vmem:[%s1661_s2 + $0x98] sm:$0xff] %v1022_v5  ;;  %v435_v7 = vpop.f32.mrb[19].mxu0  ;;  %674 = vst [vmem:[%s1661_s2 + $0x198] sm:$0xff] %v1430_v6  ;;  %v1439_v8 = vpop.f32.mrb[19].mxu1  ;;  %v780_v16 = vmul.f32 %v1022_v5, %v1022_v5 }
 0x119   :  { %v840_v9 = vadd.f32 %v839_v3, %v777_v1  ;;  %640 = vst [vmem:[%s1661_s2 + $0x88] sm:$0xff] %v435_v7  ;;  %v708_v10 = vadd.f32 %v707_v0, %v435_v7  ;;  %v778_v11 = vmul.f32 %v435_v7, %v435_v7  ;;  %672 = vst [vmem:[%s1661_s2 + $0x188] sm:$0xff] %v1439_v8 }
 0x11b   :  { %v709_v13 = vadd.f32 %v1021_v57, %v708_v10  ;;  %v841_v14 = vadd.f32 %v840_v9, %v778_v11 }
 0x11d   :  { %v842_v18 = vadd.f32 %v841_v14, %v779_v12  ;;  %v1025_v19 = vpop.f32.mrb[20].mxu0  ;;  %v710_v20 = vadd.f32 %v1022_v5, %v709_v13  ;;  %v1448_v21 = vpop.f32.mrb[20].mxu1 }
 0x11e   :  { %645 = vst [vmem:[%s1661_s2 + $0xb0] sm:$0xff] %v1025_v19  ;;  %v448_v23 = vpop.f32.mrb[21].mxu0  ;;  %677 = vst [vmem:[%s1661_s2 + $0x1b0] sm:$0xff] %v1448_v21  ;;  %v1457_v25 = vpop.f32.mrb[21].mxu1  ;;  %v783_v38 = vmul.f32 %v1025_v19, %v1025_v19 }
 0x11f   :  { %643 = vst [vmem:[%s1661_s2 + $0xa0] sm:$0xff] %v448_v23  ;;  %v711_v26 = vadd.f32 %v710_v20, %v448_v23  ;;  %v781_v27 = vmul.f32 %v448_v23, %v448_v23  ;;  %v843_v28 = vadd.f32 %v842_v18, %v780_v16  ;;  %v1026_v29 = vpop.f32.mrb[22].mxu0  ;;  %675 = vst [vmem:[%s1661_s2 + $0x1a0] sm:$0xff] %v1457_v25  ;;  %v1466_v30 = vpop.f32.mrb[22].mxu1 }
 0x120   :  { %646 = vst [vmem:[%s1661_s2 + $0xb8] sm:$0xff] %v1026_v29  ;;  %v451_v31 = vpop.f32.mrb[23].mxu0  ;;  %678 = vst [vmem:[%s1661_s2 + $0x1b8] sm:$0xff] %v1466_v30  ;;  %v1475_v32 = vpop.f32.mrb[23].mxu1  ;;  %v784_v41 = vmul.f32 %v1026_v29, %v1026_v29 }
 0x121   :  { %v844_v33 = vadd.f32 %v843_v28, %v781_v27  ;;  %644 = vst [vmem:[%s1661_s2 + $0xa8] sm:$0xff] %v451_v31  ;;  %v712_v34 = vadd.f32 %v711_v26, %v451_v31  ;;  %v782_v36 = vmul.f32 %v451_v31, %v451_v31  ;;  %676 = vst [vmem:[%s1661_s2 + $0x1a8] sm:$0xff] %v1475_v32 }
 0x123   :  { %v713_v39 = vadd.f32 %v1025_v19, %v712_v34  ;;  %v845_v40 = vadd.f32 %v844_v33, %v782_v36 }
 0x125   :  { %v846_v45 = vadd.f32 %v845_v40, %v783_v38  ;;  %v1029_v49 = vpop.f32.mrb[24].mxu0  ;;  %v714_v50 = vadd.f32 %v1026_v29, %v713_v39  ;;  %v1484_v51 = vpop.f32.mrb[24].mxu1 }
 0x126   :  { %649 = vst [vmem:[%s1661_s2 + $0xd0] sm:$0xff] %v1029_v49  ;;  %v464_v52 = vpop.f32.mrb[25].mxu0  ;;  %681 = vst [vmem:[%s1661_s2 + $0x1d0] sm:$0xff] %v1484_v51  ;;  %v1493_v53 = vpop.f32.mrb[25].mxu1  ;;  %v787_v7 = vmul.f32 %v1029_v49, %v1029_v49 }
 0x127   :  { %647 = vst [vmem:[%s1661_s2 + $0xc0] sm:$0xff] %v464_v52  ;;  %v715_v54 = vadd.f32 %v714_v50, %v464_v52  ;;  %v785_v55 = vmul.f32 %v464_v52, %v464_v52  ;;  %v847_v56 = vadd.f32 %v846_v45, %v784_v41  ;;  %v1030_v57 = vpop.f32.mrb[26].mxu0  ;;  %679 = vst [vmem:[%s1661_s2 + $0x1c0] sm:$0xff] %v1493_v53  ;;  %v1502_v58 = vpop.f32.mrb[26].mxu1 }
 0x128   :  { %650 = vst [vmem:[%s1661_s2 + $0xd8] sm:$0xff] %v1030_v57  ;;  %v467_v62 = vpop.f32.mrb[27].mxu0  ;;  %682 = vst [vmem:[%s1661_s2 + $0x1d8] sm:$0xff] %v1502_v58  ;;  %v1511_v0 = vpop.f32.mrb[27].mxu1  ;;  %v788_v11 = vmul.f32 %v1030_v57, %v1030_v57  ;;  %v793_v50 = vmul.f32 %v1277_v44, %v1277_v44 }
 0x129   :  { %v848_v1 = vadd.f32 %v847_v56, %v785_v55  ;;  %648 = vst [vmem:[%s1661_s2 + $0xc8] sm:$0xff] %v467_v62  ;;  %v716_v3 = vadd.f32 %v715_v54, %v467_v62  ;;  %v786_v5 = vmul.f32 %v467_v62, %v467_v62  ;;  %680 = vst [vmem:[%s1661_s2 + $0x1c8] sm:$0xff] %v1511_v0 }
 0x12a   :  { %v795_v62 = vmul.f32 %v1268_v42, %v1268_v42 }
 0x12b   :  { %v717_v9 = vadd.f32 %v1029_v49, %v716_v3  ;;  %v849_v10 = vadd.f32 %v848_v1, %v786_v5  ;;  %v796_v5 = vmul.f32 %v1286_v46, %v1286_v46 }
 0x12d   :  { %v850_v12 = vadd.f32 %v849_v10, %v787_v7  ;;  %v1033_v13 = vpop.f32.mrb[28].mxu0  ;;  %v718_v14 = vadd.f32 %v1030_v57, %v717_v9  ;;  %v1520_v16 = vpop.f32.mrb[28].mxu1  ;;  %v794_v57 = vmul.f32 %v1295_v48, %v1295_v48 }
 0x12e   :  { %653 = vst [vmem:[%s1661_s2 + $0xf0] sm:$0xff] %v1033_v13  ;;  %v480_v18 = vpop.f32.mrb[29].mxu0  ;;  %685 = vst [vmem:[%s1661_s2 + $0x1f0] sm:$0xff] %v1520_v16  ;;  %v1529_v19 = vpop.f32.mrb[29].mxu1  ;;  %v791_v38 = vmul.f32 %v1033_v13, %v1033_v13 }
 0x12f   :  { %651 = vst [vmem:[%s1661_s2 + $0xe0] sm:$0xff] %v480_v18  ;;  %v719_v20 = vadd.f32 %v718_v14, %v480_v18  ;;  %v789_v23 = vmul.f32 %v480_v18, %v480_v18  ;;  %v851_v26 = vadd.f32 %v850_v12, %v788_v11  ;;  %v1034_v27 = vpop.f32.mrb[30].mxu0  ;;  %683 = vst [vmem:[%s1661_s2 + $0x1e0] sm:$0xff] %v1529_v19  ;;  %v1538_v28 = vpop.f32.mrb[30].mxu1 }
 0x130   :  { %654 = vst [vmem:[%s1661_s2 + $0xf8] sm:$0xff] %v1034_v27  ;;  %v483_v29 = vpop.f32.mrb[31].mxu0  ;;  %686 = vst [vmem:[%s1661_s2 + $0x1f8] sm:$0xff] %v1538_v28  ;;  %v1547_v31 = vpop.f32.mrb[31].mxu1  ;;  %v792_v41 = vmul.f32 %v1034_v27, %v1034_v27 }
 0x131   :  { %v852_v33 = vadd.f32 %v851_v26, %v789_v23  ;;  %652 = vst [vmem:[%s1661_s2 + $0xe8] sm:$0xff] %v483_v29  ;;  %v720_v34 = vadd.f32 %v719_v20, %v483_v29  ;;  %v790_v36 = vmul.f32 %v483_v29, %v483_v29  ;;  %684 = vst [vmem:[%s1661_s2 + $0x1e8] sm:$0xff] %v1547_v31 }
 0x133   :  { %v721_v39 = vadd.f32 %v1033_v13, %v720_v34  ;;  %v853_v40 = vadd.f32 %v852_v33, %v790_v36  ;;  %v798_v13 = vmul.f32 %v1331_v4, %v1331_v4  ;;  %v802_v33 = vmul.f32 %v1367_v24, %v1367_v24 }
 0x135   :  { %v854_v45 = vadd.f32 %v853_v40, %v791_v38  ;;  %v722_v49 = vadd.f32 %v1034_v27, %v721_v39 }
 0x137   :  { %v723_v52 = vadd.f32 %v722_v49, %v1277_v44  ;;  %v855_v54 = vadd.f32 %v854_v45, %v792_v41  ;;  %v797_v44 = vmul.f32 %v1313_v61, %v1313_v61  ;;  %v806_v49 = vmul.f32 %v1403_v47, %v1403_v47 }
 0x139   :  { %v856_v55 = vadd.f32 %v855_v54, %v793_v50  ;;  %v724_v56 = vadd.f32 %v723_v52, %v1295_v48 }
 0x13b   :  { %v725_v1 = vadd.f32 %v1268_v42, %v724_v56  ;;  %v857_v3 = vadd.f32 %v856_v55, %v794_v57  ;;  %v799_v42 = vmul.f32 %v1304_v59, %v1304_v59 }
 0x13d   :  { %v858_v7 = vadd.f32 %v857_v3, %v795_v62  ;;  %v726_v9 = vadd.f32 %v1286_v46, %v725_v1  ;;  %v800_v46 = vmul.f32 %v1322_v2, %v1322_v2  ;;  %v810_v1 = vmul.f32 %v1439_v8, %v1439_v8 }
 0x13f   :  { %v727_v10 = vadd.f32 %v726_v9, %v1313_v61  ;;  %v859_v11 = vadd.f32 %v858_v7, %v796_v5  ;;  %v801_v61 = vmul.f32 %v1349_v17, %v1349_v17 }
 0x141   :  { %v860_v12 = vadd.f32 %v859_v11, %v797_v44  ;;  %v728_v48 = vadd.f32 %v727_v10, %v1331_v4 }
 0x143   :  { %v729_v14 = vadd.f32 %v1304_v59, %v728_v48  ;;  %v861_v18 = vadd.f32 %v860_v12, %v798_v13  ;;  %v803_v59 = vmul.f32 %v1340_v15, %v1340_v15  ;;  %v814_v12 = vmul.f32 %v1475_v32, %v1475_v32 }
 0x145   :  { %v862_v20 = vadd.f32 %v861_v18, %v799_v42  ;;  %v730_v23 = vadd.f32 %v1322_v2, %v729_v14  ;;  %v804_v2 = vmul.f32 %v1358_v22, %v1358_v22 }
 0x147   :  { %v731_v26 = vadd.f32 %v730_v23, %v1349_v17  ;;  %v863_v27 = vadd.f32 %v862_v20, %v800_v46  ;;  %v805_v17 = vmul.f32 %v1385_v37, %v1385_v37  ;;  %v818_v23 = vmul.f32 %v1511_v0, %v1511_v0 }
 0x149   :  { %v864_v29 = vadd.f32 %v863_v27, %v801_v61  ;;  %v732_v4 = vadd.f32 %v731_v26, %v1367_v24 }
 0x14b   :  { %v733_v34 = vadd.f32 %v1340_v15, %v732_v4  ;;  %v865_v36 = vadd.f32 %v864_v29, %v802_v33  ;;  %v807_v15 = vmul.f32 %v1376_v35, %v1376_v35 }
 0x14d   :  { %v866_v38 = vadd.f32 %v865_v36, %v803_v59  ;;  %v734_v39 = vadd.f32 %v1358_v22, %v733_v34  ;;  %v808_v22 = vmul.f32 %v1394_v43, %v1394_v43  ;;  %v822_v34 = vmul.f32 %v1547_v31, %v1547_v31 }
 0x14f   :  { %v735_v40 = vadd.f32 %v734_v39, %v1385_v37  ;;  %v867_v41 = vadd.f32 %v866_v38, %v804_v2  ;;  %v809_v37 = vmul.f32 %v1421_v63, %v1421_v63 }
 0x151   :  { %v868_v45 = vadd.f32 %v867_v41, %v805_v17  ;;  %v736_v24 = vadd.f32 %v735_v40, %v1403_v47 }
 0x153   :  { %v737_v50 = vadd.f32 %v1376_v35, %v736_v24  ;;  %v869_v52 = vadd.f32 %v868_v45, %v806_v49  ;;  %v811_v35 = vmul.f32 %v1412_v60, %v1412_v60 }
 0x155   :  { %v870_v54 = vadd.f32 %v869_v52, %v807_v15  ;;  %v738_v55 = vadd.f32 %v1394_v43, %v737_v50  ;;  %v812_v43 = vmul.f32 %v1430_v6, %v1430_v6 }
 0x157   :  { %v739_v56 = vadd.f32 %v738_v55, %v1421_v63  ;;  %v871_v57 = vadd.f32 %v870_v54, %v808_v22  ;;  %v813_v63 = vmul.f32 %v1457_v25, %v1457_v25  ;;  %v894_v54 = vld [vmem:[%s1660_s3] sm:$0x3] }
 0x159   :  { %v872_v62 = vadd.f32 %v871_v57, %v809_v37  ;;  %v740_v47 = vadd.f32 %v739_v56, %v1439_v8 }
 0x15b   :  { %v741_v3 = vadd.f32 %v1412_v60, %v740_v47  ;;  %v873_v5 = vadd.f32 %v872_v62, %v810_v1  ;;  %v815_v60 = vmul.f32 %v1448_v21, %v1448_v21 }
 0x15d   :  { %v874_v7 = vadd.f32 %v873_v5, %v811_v35  ;;  %v742_v9 = vadd.f32 %v1430_v6, %v741_v3  ;;  %v816_v6 = vmul.f32 %v1466_v30, %v1466_v30 }
 0x15f   :  { %v743_v44 = vadd.f32 %v742_v9, %v1457_v25  ;;  %v875_v10 = vadd.f32 %v874_v7, %v812_v43  ;;  %v817_v25 = vmul.f32 %v1493_v53, %v1493_v53 }
 0x161   :  { %v876_v11 = vadd.f32 %v875_v10, %v813_v63  ;;  %v744_v8 = vadd.f32 %v743_v44, %v1475_v32 }
 0x163   :  { %v745_v48 = vadd.f32 %v1448_v21, %v744_v8  ;;  %v877_v13 = vadd.f32 %v876_v11, %v814_v12  ;;  %v819_v21 = vmul.f32 %v1484_v51, %v1484_v51 }
 0x165   :  { %v878_v42 = vadd.f32 %v877_v13, %v815_v60  ;;  %v746_v14 = vadd.f32 %v1466_v30, %v745_v48  ;;  %v820_v30 = vmul.f32 %v1502_v58, %v1502_v58 }
 0x167   :  { %v747_v18 = vadd.f32 %v746_v14, %v1493_v53  ;;  %v879_v46 = vadd.f32 %v878_v42, %v816_v6  ;;  %v821_v53 = vmul.f32 %v1529_v19, %v1529_v19 }
 0x169   :  { %v880_v20 = vadd.f32 %v879_v46, %v817_v25  ;;  %v748_v32 = vadd.f32 %v747_v18, %v1511_v0 }
 0x16b   :  { %v749_v61 = vadd.f32 %v1484_v51, %v748_v32  ;;  %v881_v26 = vadd.f32 %v880_v20, %v818_v23  ;;  %v823_v51 = vmul.f32 %v1520_v16, %v1520_v16 }
 0x16d   :  { %v882_v27 = vadd.f32 %v881_v26, %v819_v21  ;;  %v750_v29 = vadd.f32 %v1502_v58, %v749_v61  ;;  %v824_v58 = vmul.f32 %v1538_v28, %v1538_v28 }
 0x16f   :  { %v751_v4 = vadd.f32 %v750_v29, %v1529_v19  ;;  %v883_v33 = vadd.f32 %v882_v27, %v820_v30 }
 0x171   :  { %v884_v59 = vadd.f32 %v883_v33, %v821_v53  ;;  %v752_v0 = vadd.f32 %v751_v4, %v1547_v31 }
 0x173   :  { %v753_v36 = vadd.f32 %v1520_v16, %v752_v0  ;;  %v885_v2 = vadd.f32 %v884_v59, %v822_v34 }
 0x175   :  { %v754_v38 = vadd.f32 %v1538_v28, %v753_v36  ;;  %v886_v39 = vadd.f32 %v885_v2, %v823_v51 }
 0x177   :  { %v755_v19 = vrot.slane %v754_v38, 4  ;;  %v887_v17 = vadd.f32 %v886_v39, %v824_v58 }
 0x179   :  { %v756_v40 = vadd.f32 %v755_v19, %v754_v38  ;;  %v888_v41 = vrot.slane %v887_v17, 4 }
 0x17b   :  { %v757_v45 = vrot.slane %v756_v40, 2  ;;  %v889_v24 = vadd.f32 %v888_v41, %v887_v17 }
 0x17d   :  { %v758_v49 = vadd.f32 %v757_v45, %v756_v40  ;;  %v890_v31 = vrot.slane %v889_v24, 2 }
 0x17f   :  { %v759_v15 = vrot.slane %v758_v49, 1  ;;  %v891_v50 = vadd.f32 %v890_v31, %v889_v24 }
 0x181   :  { %v892_v52 = vrot.slane %v891_v50, 1  ;;  %v760_v16 = vadd.f32 %v759_v15, %v758_v49 }
 0x183   :  { %v893_v22 = vadd.f32 %v892_v52, %v891_v50 }
 0x185   :  { %v896_v28 = vsel %vm895_vm0, %v760_v16, %v893_v22 }
 0x186   :  { %v897_v55 = vadd.f32 %v896_v28, %v894_v54 }
 0x188   :  { %898 = vst [vmem:[%s1660_s3] sm:$0x3] %v897_v55 }

</bundles_post_ra>
